<compile_context>
chip_gen: v7x
topology: tpu7x:2x2x1
jax: 0.10.0
libtpu: 0.0.40
codegen_flags: <defaults>
</compile_context>

<pallas_src>
import numpy as np
import jax
import jax.numpy as jnp
from jax import lax
from jax.experimental import pallas as pl
from jax.experimental.pallas import tpu as pltpu

# ---- module-consistent model dimensions ---------------------------------
BACKCAST = 10                 # backcast_length
FORECAST = 5                  # forecast_length
UNITS = 128                   # hidden_layer_units (full 128-lane vregs)
NB_BLOCKS = 3                 # nb_blocks_per_stack
NUM_STACKS = 2                # (trend, seasonality)
NUM_STEPS = NUM_STACKS * NB_BLOCKS
TREND_THETAS = 4              # thetas_dims[0]  (TrendBlock)
SEAS_THETAS = FORECAST        # SeasonalityBlock overrides thetas_dim -> forecast_length

# ---- kernel layout constants ---------------------------------------------
BC_IN_ROWS = 16               # augmented backcast rows fed to fc1 (10 data + "1" + pad)
ONES_ROW = BACKCAST           # row 10 of the state carries a constant 1.0 (bias fold)
FC_ROW0 = 16                  # forecast accumulator starts at sublane-aligned row 16
STATE_ROWS = 32               # f32 state: [backcast(10) | 1 | pad | forecast(5) | pad]
HID_K = UNITS + 16            # fc2..fc4 contraction length (bias row at index UNITS)

W1_OFF = 0                                      # rows   0..15  : fc1^T + b1
HID_OFFS = (BC_IN_ROWS,                         # rows  16..159 : fc2^T + b2
            BC_IN_ROWS + HID_K,                 # rows 160..303 : fc3^T + b3
            BC_IN_ROWS + 2 * HID_K)             # rows 304..447 : fc4^T + b4
WP_OFF = BC_IN_ROWS + 3 * HID_K                 # rows 448..479 : [-Bb^T Wt; 0; Bf^T Wt; 0]
WROWS = WP_OFF + STATE_ROWS                     # 480 rows per (stack, block) step

TILE_B = 512                  # batch tile (lane axis)
TOTAL_BATCH = 1024            # -> 2 "parallel" batch tiles (both v7x TensorCores)


# ------------------------------ Pallas kernel -----------------------------
def nbeats_kernel(x_ref, w_ref, bc_ref, fc_ref, state_ref):
    """One (stack, block) step of the N-Beats residual chain on one batch tile."""
    k = pl.program_id(1)
    tile_b = state_ref.shape[1]

    # -- initialize the running state for this batch tile ------------------
    @pl.when(k == 0)
    def _init():
        row = lax.broadcasted_iota(jnp.int32, (STATE_ROWS, tile_b), 0)
        state_ref[...] = jnp.where(row == ONES_ROW, 1.0, 0.0).astype(jnp.float32)
        state_ref[0:BACKCAST, :] = x_ref[...]

    # constant bf16 pad block (row 0 == 1) appended to hidden activations so
    # the fc2..fc4 biases ride inside the matmul K dimension.
    pad_row = lax.broadcasted_iota(jnp.int32, (HID_K - UNITS, tile_b), 0)
    ones_pad = jnp.where(pad_row == 0, 1.0, 0.0).astype(jnp.bfloat16)

    def mm_k_major(w_km, x_kt):      # (K, M) contract (K, T) over K -> (M, T), f32 acc
        return lax.dot_general(w_km, x_kt, (((0,), (0,)), ((), ())),
                               preferred_element_type=jnp.float32)

    # fc1 (+ b1 folded): consumes the augmented backcast rows of the state.
    bc_in = state_ref[0:BC_IN_ROWS, :].astype(jnp.bfloat16)           # (16, T)
    h = jnp.maximum(
        mm_k_major(w_ref[0, W1_OFF:W1_OFF + BC_IN_ROWS, :], bc_in),
        0.0).astype(jnp.bfloat16)                                      # (128, T)

    # fc2..fc4 (+ biases folded), statically unrolled.
    for off in HID_OFFS:
        h_aug = jnp.concatenate([h, ones_pad], axis=0)                 # (144, T)
        h = jnp.maximum(
            mm_k_major(w_ref[0, off:off + HID_K, :], h_aug),
            0.0).astype(jnp.bfloat16)

    # Fused residual update: state += [-Bb^T Wt ; 0 ; Bf^T Wt ; 0] @ h
    #  (backcast rows subtract, the "1" row and pad rows see zeros,
    #   forecast rows accumulate in place).
    wp = w_ref[0, WP_OFF:WP_OFF + STATE_ROWS, :]                       # (32, 128)
    proj = lax.dot_general(wp, h, (((1,), (0,)), ((), ())),
                           preferred_element_type=jnp.float32)         # (32, T)
    state_ref[...] = state_ref[...] + proj

    # -- emit the two lane-dense outputs after the last block ---------------
    @pl.when(k == NUM_STEPS - 1)
    def _emit():
        bc_ref[...] = state_ref[0:BACKCAST, :]
        fc_ref[...] = state_ref[FC_ROW0:FC_ROW0 + FORECAST, :]


def nbeats_forward(x_fb, w_packed, *, tile_b=TILE_B):
    """x_fb: (BACKCAST, batch) f32 in [features, batch] layout (no host transposes).

    Returns (backcast, forecast) as (BACKCAST, batch), (FORECAST, batch) f32.
    """
    feat, batch = x_fb.shape
    assert feat == BACKCAST
    n_bt = pl.cdiv(batch, tile_b)
    batch_pad = n_bt * tile_b
    if batch_pad != batch:                 # robustness path; no-op when aligned
        x_fb = jnp.pad(x_fb, ((0, 0), (0, batch_pad - batch)))

    flops = 2 * NUM_STEPS * batch_pad * (BC_IN_ROWS * UNITS
                                         + 3 * HID_K * UNITS
                                         + STATE_ROWS * UNITS)
    bytes_accessed = (int(w_packed.size) * w_packed.dtype.itemsize * n_bt
                      + 4 * (int(x_fb.size) + (BACKCAST + FORECAST) * batch_pad))

    bc, fc = pl.pallas_call(
        nbeats_kernel,
        out_shape=(jax.ShapeDtypeStruct((BACKCAST, batch_pad), jnp.float32),
                   jax.ShapeDtypeStruct((FORECAST, batch_pad), jnp.float32)),
        grid=(n_bt, NUM_STEPS),
        in_specs=[
            # input tile: constant across the block axis (no re-DMA across k)
            pl.BlockSpec((BACKCAST, tile_b), lambda i, k: (0, i)),
            # one block's packed weights per step: streamed & double-buffered
            pl.BlockSpec((1, WROWS, UNITS), lambda i, k: (k, 0, 0)),
        ],
        out_specs=[
            pl.BlockSpec((BACKCAST, tile_b), lambda i, k: (0, i)),
            pl.BlockSpec((FORECAST, tile_b), lambda i, k: (0, i)),
        ],
        scratch_shapes=[pltpu.VMEM((STATE_ROWS, tile_b), jnp.float32)],
        compiler_params=pltpu.CompilerParams(
            dimension_semantics=("parallel", "arbitrary")),
        cost_estimate=pl.CostEstimate(flops=int(flops), transcendentals=0,
                                      bytes_accessed=int(bytes_accessed)),
    )(x_fb, w_packed)

    if batch_pad != batch:
        bc, fc = bc[:, :batch], fc[:, :batch]
    return bc, fc


# ----------------------------- host-side setup ----------------------------
def make_linspace(backcast_length, forecast_length):
    lin = np.linspace(-backcast_length, forecast_length,
                      backcast_length + forecast_length)
    return lin[:backcast_length], lin[backcast_length:]


def trend_basis(p, t):
    # rows: t^0, t^1, ..., t^(p-1) -> (p, len(t))
    return np.stack([t ** i for i in range(p)]).astype(np.float32)


def seasonality_basis(p, t):
    p1, p2 = (p // 2, p // 2) if p % 2 == 0 else (p // 2, p // 2 + 1)
    s1 = [np.cos(2 * np.pi * i * t) for i in range(p1)]
    s2 = [np.sin(2 * np.pi * i * t) for i in range(p2)]
    return np.stack(s1 + s2).astype(np.float32)                 # (p, len(t))


def init_linear(key, fan_in, fan_out, bias=True):
    # PyTorch nn.Linear default: U(-1/sqrt(fan_in), 1/sqrt(fan_in)); torch layout.
    bound = 1.0 / np.sqrt(fan_in)
    kw, kb = jax.random.split(key)
    W = jax.random.uniform(kw, (fan_out, fan_in), jnp.float32, -bound, bound)
    b = (jax.random.uniform(kb, (fan_out,), jnp.float32, -bound, bound)
         if bias else None)
    return W, b


def build_stack(key, thetas_dim):
    """Torch-layout params for NB_BLOCKS blocks of one stack (share_thetas)."""
    blocks = []
    for _ in range(NB_BLOCKS):
        key, k1, k2, k3, k4, kt = jax.random.split(key, 6)
        W1, b1 = init_linear(k1, BACKCAST, UNITS)
        W2, b2 = init_linear(k2, UNITS, UNITS)
        W3, b3 = init_linear(k3, UNITS, UNITS)
        W4, b4 = init_linear(k4, UNITS, UNITS)
        Wt, _ = init_linear(kt, UNITS, thetas_dim, bias=False)
        blocks.append(dict(W1=W1, b1=b1, W2=W2, b2=b2, W3=W3, b3=b3,
                           W4=W4, b4=b4, Wt=Wt))
    return blocks


def pack_params(trend_blocks, seas_blocks, Tb, Tf, Sb, Sf):
    """Fold biases / theta_fc / basis matrices into one lane-dense bf16 array
    of shape (NUM_STEPS, WROWS, UNITS): one contiguous weight slab per block."""
    Tb, Tf, Sb, Sf = map(jnp.asarray, (Tb, Tf, Sb, Sf))
    steps = []
    for blocks, Bb, Bf in ((trend_blocks, Tb, Tf), (seas_blocks, Sb, Sf)):
        for blk in blocks:
            w = jnp.zeros((WROWS, UNITS), jnp.float32)
            # fc1 + b1 folded (K-major: rows 0..9 = W1^T, row 10 = b1)
            w = w.at[W1_OFF:W1_OFF + BACKCAST].set(blk['W1'].T)
            w = w.at[W1_OFF + ONES_ROW].set(blk['b1'])
            # fc2..fc4 + biases folded (K-major, bias at K row = UNITS)
            for off, (Wn, bn) in zip(HID_OFFS,
                                     (('W2', 'b2'), ('W3', 'b3'), ('W4', 'b4'))):
                w = w.at[off:off + UNITS].set(blk[Wn].T)
                w = w.at[off + UNITS].set(blk[bn])
            # theta_fc folded into the basis (M-major), backcast rows negated,
            # forecast rows at the sublane-aligned offset FC_ROW0.
            w = w.at[WP_OFF:WP_OFF + BACKCAST].set(-(Bb.T @ blk['Wt']))
            w = w.at[WP_OFF + FC_ROW0:WP_OFF + FC_ROW0 + FORECAST].set(Bf.T @ blk['Wt'])
            steps.append(w)
    return jnp.stack(steps).astype(jnp.bfloat16)


def reference_forward(x, trend_blocks, seas_blocks, Tb, Tf, Sb, Sf):
    """Pure-JAX mirror of NBeatsNet.forward (torch op order), x: (batch, BACKCAST)."""
    backcast = x
    forecast = jnp.zeros((x.shape[0], FORECAST), jnp.float32)
    for blocks, Bb, Bf in ((trend_blocks, Tb, Tf), (seas_blocks, Sb, Sf)):
        for blk in blocks:
            h = jnp.maximum(backcast @ blk['W1'].T + blk['b1'], 0.0)
            h = jnp.maximum(h @ blk['W2'].T + blk['b2'], 0.0)
            h = jnp.maximum(h @ blk['W3'].T + blk['b3'], 0.0)
            h = jnp.maximum(h @ blk['W4'].T + blk['b4'], 0.0)
            theta = h @ blk['Wt'].T
            backcast = backcast - theta @ Bb
            forecast = forecast + theta @ Bf
    return backcast, forecast


def quantize_blocks(blocks):
    """Round weights through bf16 (what the kernel consumes); math stays f32."""
    q = lambda a: jnp.asarray(a, jnp.bfloat16).astype(jnp.float32)
    return [{name: q(val) for name, val in blk.items()} for blk in blocks]


def assert_close(name, got, ref, tol=5e-2):
    got = np.asarray(got, np.float32)
    ref = np.asarray(ref, np.float32)
    scale = float(np.max(np.abs(ref)))
    np.testing.assert_allclose(got, ref, rtol=tol, atol=tol * max(scale, 1.0),
                               err_msg=name)


if __name__ == "__main__":
    key = jax.random.PRNGKey(0)
    k_x, k_tr, k_se = jax.random.split(key, 3)

    # input time series in the kernel's native [features, batch] layout
    x_fb = jax.random.normal(k_x, (BACKCAST, TOTAL_BATCH), jnp.float32)

    # block parameters (torch layout, PyTorch-default init)
    trend_blocks = build_stack(k_tr, TREND_THETAS)
    seas_blocks = build_stack(k_se, SEAS_THETAS)

    # basis matrices (computed exactly as in the torch reference)
    t_b, t_f = make_linspace(BACKCAST, FORECAST)
    Tb = trend_basis(TREND_THETAS, t_b)          # (4, 10)
    Tf = trend_basis(TREND_THETAS, t_f)          # (4, 5)
    Sb = seasonality_basis(SEAS_THETAS, t_b)     # (5, 10)
    Sf = seasonality_basis(SEAS_THETAS, t_f)     # (5, 5)

    # packed, folded, bf16 kernel weights
    w_packed = pack_params(trend_blocks, seas_blocks, Tb, Tf, Sb, Sf)

    fwd = jax.jit(nbeats_forward)
    bc_out, fc_out = jax.block_until_ready(fwd(x_fb, w_packed))
    assert bc_out.shape == (BACKCAST, TOTAL_BATCH)
    assert fc_out.shape == (FORECAST, TOTAL_BATCH)

    # Correctness check: torch-op-order pure-JAX reference using the same
    # bf16-rounded weights the kernel consumes (kernel accumulates in f32);
    # the tolerance covers the kernel's per-matmul bf16 activation casts
    # amplified through the 6-block residual chain.
    ref_b, ref_f = reference_forward(
        x_fb.T, quantize_blocks(trend_blocks), quantize_blocks(seas_blocks),
        jnp.asarray(Tb), jnp.asarray(Tf), jnp.asarray(Sb), jnp.asarray(Sf))
    assert_close("backcast", np.asarray(bc_out).T, ref_b)
    assert_close("forecast", np.asarray(fc_out).T, ref_f)

    print("KERNEL_OK")
</pallas_src>

<mosaic_0001>
module attributes {stable_mosaic.version = 11 : i64} {
  func.func @nbeats_kernel(%arg0: i32, %arg1: i32, %arg2: memref<10x512xf32, #tpu.memory_space<vmem>>, %arg3: memref<1x480x128xbf16, #tpu.memory_space<vmem>>, %arg4: memref<10x512xf32, #tpu.memory_space<vmem>>, %arg5: memref<5x512xf32, #tpu.memory_space<vmem>>, %arg6: memref<32x512xf32, #tpu.memory_space<vmem>>) attributes {dimension_semantics = [#tpu.dimension_semantics<parallel>, #tpu.dimension_semantics<arbitrary>], iteration_bounds = array<i64: 2, 6>, scalar_prefetch = 0 : i64, scratch_operands = 1 : i64, tpu.core_type = #tpu.core_type<tc>, window_params = [{transform_indices = @transform_0, window_bounds = array<i64: 10, 512>}, {transform_indices = @transform_1, window_bounds = array<i64: 1, 480, 128>}, {transform_indices = @transform_2, window_bounds = array<i64: 10, 512>}, {transform_indices = @transform_3, window_bounds = array<i64: 5, 512>}]} {
    %c0_i32 = arith.constant 0 : i32
    %0 = arith.cmpi eq, %arg1, %c0_i32 : i32
    %1 = arith.extui %0 : i1 to i32
    %c0_i32_0 = arith.constant 0 : i32
    %2 = arith.cmpi ne, %1, %c0_i32_0 : i32
    scf.if %2 {
      %48 = tpu.iota {dimensions = array<i32: 0>} : vector<32x512xi32>
      %c10_i32 = arith.constant 10 : i32
      %49 = vector.broadcast %c10_i32 : i32 to vector<32x512xi32>
      %50 = arith.cmpi eq, %48, %49 : vector<32x512xi32>
      %cst_29 = arith.constant 1.000000e+00 : f32
      %cst_30 = arith.constant 0.000000e+00 : f32
      %51 = vector.broadcast %cst_29 : f32 to vector<32x512xf32>
      %52 = vector.broadcast %cst_30 : f32 to vector<32x512xf32>
      %53 = arith.select %50, %51, %52 : vector<32x512xi1>, vector<32x512xf32>
      %c0_31 = arith.constant 0 : index
      %c0_32 = arith.constant 0 : index
      %54 = vector.load %arg6[%c0_31, %c0_32] : memref<32x512xf32, #tpu.memory_space<vmem>>, vector<32x512xf32>
      tpu.vector_store %arg6[%c0_31, %c0_32], %53 {strides = array<i32>} : memref<32x512xf32, #tpu.memory_space<vmem>>, vector<32x512xf32>,
      %c0_33 = arith.constant 0 : index
      %c0_34 = arith.constant 0 : index
      %55 = vector.load %arg2[%c0_33, %c0_34] : memref<10x512xf32, #tpu.memory_space<vmem>>, vector<10x512xf32>
      %c0_35 = arith.constant 0 : index
      %c0_36 = arith.constant 0 : index
      %56 = vector.load %arg6[%c0_35, %c0_36] : memref<32x512xf32, #tpu.memory_space<vmem>>, vector<10x512xf32>
      tpu.vector_store %arg6[%c0_35, %c0_36], %55 {strides = array<i32>} : memref<32x512xf32, #tpu.memory_space<vmem>>, vector<10x512xf32>,
    } else {
    }
    %3 = tpu.iota {dimensions = array<i32: 0>} : vector<16x512xi32>
    %c0_i32_1 = arith.constant 0 : i32
    %4 = vector.broadcast %c0_i32_1 : i32 to vector<16x512xi32>
    %5 = arith.cmpi eq, %3, %4 : vector<16x512xi32>
    %cst = arith.constant 1.000000e+00 : f32
    %cst_2 = arith.constant 0.000000e+00 : f32
    %6 = vector.broadcast %cst : f32 to vector<16x512xf32>
    %7 = vector.broadcast %cst_2 : f32 to vector<16x512xf32>
    %8 = arith.select %5, %6, %7 : vector<16x512xi1>, vector<16x512xf32>
    %9 = arith.truncf %8 : vector<16x512xf32> to vector<16x512xbf16>
    %c0 = arith.constant 0 : index
    %c0_3 = arith.constant 0 : index
    %10 = vector.load %arg6[%c0, %c0_3] : memref<32x512xf32, #tpu.memory_space<vmem>>, vector<16x512xf32>
    %11 = arith.truncf %10 : vector<16x512xf32> to vector<16x512xbf16>
    %c0_4 = arith.constant 0 : index
    %c0_5 = arith.constant 0 : index
    %c0_6 = arith.constant 0 : index
    %12 = vector.load %arg3[%c0_4, %c0_5, %c0_6] : memref<1x480x128xbf16, #tpu.memory_space<vmem>>, vector<1x16x128xbf16>
    %13 = vector.shape_cast %12 : vector<1x16x128xbf16> to vector<16x128xbf16>
    %cst_7 = arith.constant dense<0.000000e+00> : vector<128x512xf32>
    %14 = tpu.matmul %13, %11, %cst_7 {dimension_numbers = #tpu.dot_dimension_numbers<[0], [0], [1], [1], [0, 1, 1, 1], [], []>} : vector<16x128xbf16>, vector<16x512xbf16>, vector<128x512xf32> -> vector<128x512xf32>
    %cst_8 = arith.constant 0.000000e+00 : f32
    %15 = vector.broadcast %cst_8 : f32 to vector<128x512xf32>
    %16 = arith.maximumf %14, %15 : vector<128x512xf32>
    %17 = arith.truncf %16 : vector<128x512xf32> to vector<128x512xbf16>
    %18 = tpu.concatenate %17, %9 in 0 : vector<128x512xbf16>, vector<16x512xbf16> -> vector<144x512xbf16>
    %c0_9 = arith.constant 0 : index
    %c16 = arith.constant 16 : index
    %c0_10 = arith.constant 0 : index
    %19 = vector.load %arg3[%c0_9, %c16, %c0_10] : memref<1x480x128xbf16, #tpu.memory_space<vmem>>, vector<1x144x128xbf16>
    %20 = vector.shape_cast %19 : vector<1x144x128xbf16> to vector<144x128xbf16>
    %cst_11 = arith.constant dense<0.000000e+00> : vector<128x512xf32>
    %21 = tpu.matmul %20, %18, %cst_11 {dimension_numbers = #tpu.dot_dimension_numbers<[0], [0], [1], [1], [0, 1, 1, 1], [], []>} : vector<144x128xbf16>, vector<144x512xbf16>, vector<128x512xf32> -> vector<128x512xf32>
    %cst_12 = arith.constant 0.000000e+00 : f32
    %22 = vector.broadcast %cst_12 : f32 to vector<128x512xf32>
    %23 = arith.maximumf %21, %22 : vector<128x512xf32>
    %24 = arith.truncf %23 : vector<128x512xf32> to vector<128x512xbf16>
    %25 = tpu.concatenate %24, %9 in 0 : vector<128x512xbf16>, vector<16x512xbf16> -> vector<144x512xbf16>
    %c0_13 = arith.constant 0 : index
    %c160 = arith.constant 160 : index
    %c0_14 = arith.constant 0 : index
    %26 = vector.load %arg3[%c0_13, %c160, %c0_14] : memref<1x480x128xbf16, #tpu.memory_space<vmem>>, vector<1x144x128xbf16>
    %27 = vector.shape_cast %26 : vector<1x144x128xbf16> to vector<144x128xbf16>
    %cst_15 = arith.constant dense<0.000000e+00> : vector<128x512xf32>
    %28 = tpu.matmul %27, %25, %cst_15 {dimension_numbers = #tpu.dot_dimension_numbers<[0], [0], [1], [1], [0, 1, 1, 1], [], []>} : vector<144x128xbf16>, vector<144x512xbf16>, vector<128x512xf32> -> vector<128x512xf32>
    %cst_16 = arith.constant 0.000000e+00 : f32
    %29 = vector.broadcast %cst_16 : f32 to vector<128x512xf32>
    %30 = arith.maximumf %28, %29 : vector<128x512xf32>
    %31 = arith.truncf %30 : vector<128x512xf32> to vector<128x512xbf16>
    %32 = tpu.concatenate %31, %9 in 0 : vector<128x512xbf16>, vector<16x512xbf16> -> vector<144x512xbf16>
    %c0_17 = arith.constant 0 : index
    %c304 = arith.constant 304 : index
    %c0_18 = arith.constant 0 : index
    %33 = vector.load %arg3[%c0_17, %c304, %c0_18] : memref<1x480x128xbf16, #tpu.memory_space<vmem>>, vector<1x144x128xbf16>
    %34 = vector.shape_cast %33 : vector<1x144x128xbf16> to vector<144x128xbf16>
    %cst_19 = arith.constant dense<0.000000e+00> : vector<128x512xf32>
    %35 = tpu.matmul %34, %32, %cst_19 {dimension_numbers = #tpu.dot_dimension_numbers<[0], [0], [1], [1], [0, 1, 1, 1], [], []>} : vector<144x128xbf16>, vector<144x512xbf16>, vector<128x512xf32> -> vector<128x512xf32>
    %cst_20 = arith.constant 0.000000e+00 : f32
    %36 = vector.broadcast %cst_20 : f32 to vector<128x512xf32>
    %37 = arith.maximumf %35, %36 : vector<128x512xf32>
    %38 = arith.truncf %37 : vector<128x512xf32> to vector<128x512xbf16>
    %c0_21 = arith.constant 0 : index
    %c448 = arith.constant 448 : index
    %c0_22 = arith.constant 0 : index
    %39 = vector.load %arg3[%c0_21, %c448, %c0_22] : memref<1x480x128xbf16, #tpu.memory_space<vmem>>, vector<1x32x128xbf16>
    %40 = vector.shape_cast %39 : vector<1x32x128xbf16> to vector<32x128xbf16>
    %cst_23 = arith.constant dense<0.000000e+00> : vector<32x512xf32>
    %41 = tpu.matmul %40, %38, %cst_23 {dimension_numbers = #tpu.dot_dimension_numbers<[1], [0], [0], [1], [0, 0, 1, 1], [], []>} : vector<32x128xbf16>, vector<128x512xbf16>, vector<32x512xf32> -> vector<32x512xf32>
    %c0_24 = arith.constant 0 : index
    %c0_25 = arith.constant 0 : index
    %42 = vector.load %arg6[%c0_24, %c0_25] : memref<32x512xf32, #tpu.memory_space<vmem>>, vector<32x512xf32>
    %43 = arith.addf %42, %41 : vector<32x512xf32>
    %c0_26 = arith.constant 0 : index
    %c0_27 = arith.constant 0 : index
    %44 = vector.load %arg6[%c0_26, %c0_27] : memref<32x512xf32, #tpu.memory_space<vmem>>, vector<32x512xf32>
    tpu.vector_store %arg6[%c0_26, %c0_27], %43 {strides = array<i32>} : memref<32x512xf32, #tpu.memory_space<vmem>>, vector<32x512xf32>,
    %c5_i32 = arith.constant 5 : i32
    %45 = arith.cmpi eq, %arg1, %c5_i32 : i32
    %46 = arith.extui %45 : i1 to i32
    %c0_i32_28 = arith.constant 0 : i32
    %47 = arith.cmpi ne, %46, %c0_i32_28 : i32
    scf.if %47 {
      %c0_29 = arith.constant 0 : index
      %c0_30 = arith.constant 0 : index
      %48 = vector.load %arg6[%c0_29, %c0_30] : memref<32x512xf32, #tpu.memory_space<vmem>>, vector<10x512xf32>
      %c0_31 = arith.constant 0 : index
      %c0_32 = arith.constant 0 : index
      %49 = vector.load %arg4[%c0_31, %c0_32] : memref<10x512xf32, #tpu.memory_space<vmem>>, vector<10x512xf32>
      tpu.vector_store %arg4[%c0_31, %c0_32], %48 {strides = array<i32>} : memref<10x512xf32, #tpu.memory_space<vmem>>, vector<10x512xf32>,
      %c16_33 = arith.constant 16 : index
      %c0_34 = arith.constant 0 : index
      %50 = vector.load %arg6[%c16_33, %c0_34] : memref<32x512xf32, #tpu.memory_space<vmem>>, vector<5x512xf32>
      %c0_35 = arith.constant 0 : index
      %c0_36 = arith.constant 0 : index
      %51 = vector.load %arg5[%c0_35, %c0_36] : memref<5x512xf32, #tpu.memory_space<vmem>>, vector<5x512xf32>
      tpu.vector_store %arg5[%c0_35, %c0_36], %50 {strides = array<i32>} : memref<5x512xf32, #tpu.memory_space<vmem>>, vector<5x512xf32>,
    } else {
    }
    return
  }
  func.func @transform_0(%arg0: i32, %arg1: i32) -> (i32, i32) {
    %c0_i32 = arith.constant 0 : i32
    %c0_i32_0 = arith.constant 0 : i32
    return %c0_i32, %arg0 : i32, i32
  }
  func.func @transform_1(%arg0: i32, %arg1: i32) -> (i32, i32, i32) {
    %c0_i32 = arith.constant 0 : i32
    %c0_i32_0 = arith.constant 0 : i32
    %c0_i32_1 = arith.constant 0 : i32
    return %arg1, %c0_i32, %c0_i32_0 : i32, i32, i32
  }
  func.func @transform_2(%arg0: i32, %arg1: i32) -> (i32, i32) {
    %c0_i32 = arith.constant 0 : i32
    %c0_i32_0 = arith.constant 0 : i32
    return %c0_i32, %arg0 : i32, i32
  }
  func.func @transform_3(%arg0: i32, %arg1: i32) -> (i32, i32) {
    %c0_i32 = arith.constant 0 : i32
    %c0_i32_0 = arith.constant 0 : i32
    return %c0_i32, %arg0 : i32, i32
  }
}

</mosaic_0001>

<bundles_post_ra>
// kernel: nbeats_forward.1
= control target key start
LH: loop header
LB: loop body
LE: loop exit
PB: predicated region body
PF: predicated region fallthrough
CT: control target
= control target key end

     0   :  { %s3534_s0 = inlined_call_operand.hbm [shape: f32[10,1024], index: 0, kind: input, shape index: {}]   ;;  %s3535_s1 = inlined_call_operand.hbm [shape: bf16[6,480,128], index: 1, kind: input, shape index: {}]   ;;  %s3536_s2 = inlined_call_operand.hbm [shape: f32[10,1024], index: 2, kind: output, shape index: {0}]   ;;  %s3537_s3 = inlined_call_operand.hbm [shape: f32[5,1024], index: 3, kind: output, shape index: {1}]  }
   0x1   :  { %3547 = sst [smem:[#allocation18_spill]] %s3534_s0 }
   0x2   :  { %3548 = sst [smem:[#allocation19_spill]] %s3535_s1 }
   0x3   :  { %3549 = sst [smem:[#allocation20_spill]] %s3536_s2 }
   0x4   :  { %9 = vsyncpa [#allocation4], 0 }
   0x5   :  { %11 = vsyncpa [#allocation4 + $0x1], 0 }
   0x6   :  { %12 = vsyncpa [#allocation7], 0 }
   0x7   :  { %14 = vsyncpa [#allocation7 + $0x1], 0 }
   0x8   :  { %15 = vsyncpa [#allocation5], 0 }
   0x9   :  { %17 = vsyncpa [#allocation5 + $0x1], 0 }
   0xa   :  { %18 = vsyncpa [#allocation10], 0 }
   0xb   :  { %20 = vsyncpa [#allocation10 + $0x1], 0  ;;  %s2986_s12 = smov 0   ;;  %s2988_s13 = smov 0  }
   0xc   :  { %s2990_s14 = smov 0   ;;  %s2992_s15 = smov 0  }
   0xd   :  { %s2994_s16 = smov 0   ;;  %s2996_s17 = smov 0  }
   0xe   :  { %s2998_s18 = smov 0   ;;  %s3000_s19 = smov 0  }
   0xf   :  { %s3002_s20 = smov 0   ;;  %s3004_s21 = smov 0  }
  0x10   :  { %s3006_s22 = smov 0  }
  0x11 LB: > { %3550 = sst [smem:[#allocation15_spill]] %s2943_s21  ;;  %s2416_s23 = sadd.s32 4294967295, %s2947_s22   ;;  %s2947_s22 = sphi %s3006_s22, %s26_s22   ;;  %s2943_s21 = sphi %s3004_s21, %s3577_s21   ;;  %s2939_s20 = sphi %s3002_s20, %s3585_s20   ;;  %s2935_s19 = sphi %s3000_s19, %s3575_s19   ;;  %s2931_s18 = sphi %s2998_s18, %s3584_s18   ;;  %s2927_s17 = sphi %s2996_s17, %s3583_s17   ;;  %s2923_s16 = sphi %s2994_s16, %s3582_s16   ;;  %s2919_s15 = sphi %s2992_s15, %s3581_s15   ;;  %s2915_s14 = sphi %s2990_s14, %s3580_s14   ;;  %s2911_s13 = sphi %s2988_s13, %s3579_s13   ;;  %s2907_s12 = sphi %s2986_s12, %s3578_s12  }
  0x12   : > { %s2417_s24 = sadd.s32 4294967294, %s2947_s22   ;;  %s38_s25 = sadd.s32 1, %s2943_s21 }
  0x13   : > { %s45_s26 = sadd.s32 1, %s2927_s17  ;;  %p52_p0 = scmp.ne.s32.totalorder %s2927_s17, %s2923_s16 }
  0x14   : > { %p3539_p1 = scmp.eq.s32.totalorder %s2947_s22, 0  ;;  %p3540_p2 = scmp.ne.s32.totalorder %s2923_s16, %s2919_s15 }
  0x15   : > { %p108_p3 = scmp.eq.s32.totalorder %s2416_s23, 11  ;;  %p114_p5 = scmp.eq.s32.totalorder %s2417_s24, 11 }
  0x16   : > { %p54_p4 = por %p3539_p1, %p52_p0  ;;  %p3538_p8 = scmp.lt.s32.totalorder %s2947_s22, 12 }
  0x17   : > { %p3054_p6 = por %p108_p3, %p52_p0  ;;  %p3061_p7 = por %p114_p5, %p3540_p2 }
  0x18   : > { %s160_s29 = sand.u32 1, %s2927_s17   ;;  %s2568_s30 = sshll.u32 %s2943_s21, 9 }
  0x19   : > { %s3551_s27 = scalar_select %p3054_p6, 1, 0 }
  0x1a   : > { %s3552_s28 = scalar_select %p3061_p7, 1, 0 }
  0x1b   : > { %s2420_s4 = sshll.u32 %s160_s29, 6  ;;  %s3553_s0 = sld [smem:[#allocation18_spill]] }
  0x1c   : > { %s164_s8 = scalar_lea.vmem [#allocation3], %s2420_s4  ;;  %p3075_p9 = pnand %p3538_p8, %p54_p4 }
  0x1d   : > { %s171_s9 = sshll.u32 %s164_s8, 4  ;;  %s3082_s11 = scalar_lea.sflag [#allocation4], %s160_s29  ;;  %s3079_s9 = int_to_ptr.vmem [resolvable:$true] %s171_s9 }
  0x1e   : > { %p2731_p12 = pneg %p3075_p9 }
  0x21   : > { %s3071_s7 = scalar_lea.hbm %s3553_s0, %s2568_s30  ;;  %s2734_s5 = scalar_lea.hbm %s3553_s0, 2048 }
  0x22   : > { %s2729_s24 = scalar_lea.hbm %s3071_s7, 1024  ;;  %p2735_p3 = scmp.lt.u32.totalorder %s3071_s7, %s3553_s0 }
  0x23   : > { %p2730_p11 = scmp.ne.s32.totalorder %s3071_s7, %s2729_s24  ;;  %p2736_p4 = scmp.lt.u32.totalorder %s2734_s5, %s2729_s24 }
  0x24   : > { %p2738_p8 = scmp.lt.u32.totalorder %s2729_s24, %s3071_s7 }
  0x25   : > { %p2732_p13 = pnand %p2731_p12, %p2730_p11  ;;  %p2737_p5 = por %p2736_p4, %p2735_p3 }
  0x27   : > { %p2733_p0 = pneg %p2732_p13  ;;  %p2739_p1 = por %p2738_p8, %p2737_p5 }
  0x29   : > { %p2740_p2 = pnand %p2739_p1, %p2733_p0 }
  0x2b   : > { %2743 = shalt.err (!%p2740_p2)
}
  0x2c   : > { %s2744_s29 = scalar_lea.vmem %s3079_s9, 1024  ;;  %s2949_s30 = smov [#allocation3]  }
  0x2d   : > { %p2745_p11 = scmp.ne.s32.totalorder %s3079_s9, %s2744_s29  ;;  %s2749_s4 = sshll.u32 %s2949_s30, 4  ;;  %s2750_s4 = int_to_ptr.vmem [resolvable:$false] %s2749_s4 }
  0x2e   : > { %s2751_s6 = scalar_lea.vmem %s2750_s4, 2048  ;;  %p2752_p7 = scmp.lt.s32.totalorder %s3079_s9, %s2750_s4 }
  0x2f   : > { %p2747_p13 = pnand %p2745_p11, %p2731_p12  ;;  %p2753_p3 = scmp.lt.s32.totalorder %s2751_s6, %s2744_s29 }
  0x31   : > { %p2748_p10 = pneg %p2747_p13  ;;  %p2754_p4 = por %p2753_p3, %p2752_p7 }
  0x33   : > { %p2755_p8 = pnand %p2754_p4, %p2748_p10 }
  0x35   : > { %2758 = shalt.err (!%p2755_p8)
}
  0x36   : > { %s2950_s24 = smov 1024   ;;  %s2951_s5 = smov 512  }
  0x37   : > { %s2952_s8 = smov 32   ;;  %p200_p1 = scmp.lt.s32.totalorder %s2947_s22, 13 }
  0x38   : > { %2585 = dma.hbm_to_vmem [thread:$0]  (!%p3075_p9), %s3071_s7, 1024, %s3079_s9, %s3082_s11, %s2950_s24, %s2951_s5, %s2952_s8  }
  0x39   : > { %p3555_p2 = scmp.ge.s32.totalorder %s2947_s22, 1  ;;  %s35_s30 = sadd.s32 1, %s2939_s20 }
  0x3a   : > { %p3120_p10 = scmp.eq.s32.totalorder %s2416_s23, 0  ;;  %p36_p12 = scmp.ge.s32.totalorder %s35_s30, 6 }
  0x3b   : > { %p3113_p7 = pnand %p3555_p2, %p200_p1  ;;  %s71_s10 = sadd.s32 1, %s2915_s14 }
  0x3c   : > { %p3558_p9 = scmp.ne.s32.totalorder %s2923_s16, %s2919_s15  ;;  %p78_p5 = scmp.ne.s32.totalorder %s2915_s14, %s2911_s13 }
  0x3d   : > { %s3587_s30 = smov (%p36_p12, %s35_s30), 0  ;;  %s3589_s25 = smov (!%p36_p12, %s38_s25), %s2943_s21 }
  0x3e   : > { %p3130_p0 = por %p3120_p10, %p3558_p9  ;;  %3560 = sst [smem:[#allocation16_spill]] %s3587_s30 }
  0x3f   : > { %s68_s23 = ssub.s32 %s2939_s20, %s3587_s30  ;;  %p3561_p11 = scmp.eq.s32.totalorder %s2947_s22, 0 }
  0x40   : > { %s3559_s7 = scalar_select %p3130_p0, 1, 0 }
  0x41   : > { %p80_p13 = por %p78_p5, %p3561_p11  ;;  %p40_p3 = scmp.ge.s32.totalorder %s3589_s25, 2 }
  0x42   : > { %p69_p4 = scmp.eq.s32.totalorder %s68_s23, 0  ;;  %p84_p8 = scmp.ne.s32.totalorder %s2911_s13, %s2907_s12 }
  0x43   : > { %s181_s9 = sand.u32 1, %s2915_s14   ;;  %s3591_s25 = smov (%p40_p3, %s3589_s25), 0 }
  0x44   : > { %3562 = sst [smem:[#allocation17_spill]] %s3591_s25  ;;  %s42_s6 = ssub.s32 %s2943_s21, %s3591_s25 }
  0x45   : > { %s3151_s11 = scalar_select %p69_p4, %s2915_s14, %s71_s10  }
  0x46   : > { %p3157_p1 = por %p84_p8, %p3120_p10  ;;  %p43_p2 = scmp.eq.s32.totalorder %s42_s6, 0 }
  0x47   : > { %s2571_s5 = smul.u32 240, %s181_s9  ;;  %p3564_p12 = scmp.lt.s32.totalorder %s2947_s22, 12 }
  0x48   : > { %s3563_s24 = scalar_select %p3157_p1, 1, 0 }
  0x49   : > { %p3163_p9 = pnand %p3564_p12, %p80_p13  ;;  %s2572_s10 = smul.u32 3840, %s2939_s20 }
  0x4a   : > { %s3170_s12 = scalar_select %p43_p2, %s2927_s17, %s45_s26  }
  0x4b   : > { %s185_s23 = scalar_lea.vmem [#allocation6], %s2571_s5  ;;  %s3566_s1 = sld [smem:[#allocation19_spill]] }
  0x4c   : > { %s192_s0 = sshll.u32 %s185_s23, 4  ;;  %s3180_s6 = scalar_lea.sflag [#allocation7], %s181_s9  ;;  %s3178_s0 = int_to_ptr.vmem [resolvable:$true] %s192_s0 }
  0x4d   : > { %p2761_p5 = pneg %p3163_p9 }
  0x51   : > { %s3176_s30 = scalar_lea.hbm %s3566_s1, %s2572_s10  ;;  %s2764_s5 = scalar_lea.hbm %s3566_s1, 23040 }
  0x52   : > { %s2759_s21 = scalar_lea.hbm %s3176_s30, 3840  ;;  %p2765_p3 = scmp.lt.u32.totalorder %s3176_s30, %s3566_s1 }
  0x53   : > { %p2760_p10 = scmp.ne.s32.totalorder %s3176_s30, %s2759_s21  ;;  %p2766_p4 = scmp.lt.u32.totalorder %s2764_s5, %s2759_s21 }
  0x54   : > { %p2768_p2 = scmp.lt.u32.totalorder %s2759_s21, %s3176_s30 }
  0x55   : > { %p2762_p11 = pnand %p2761_p5, %p2760_p10  ;;  %p2767_p8 = por %p2766_p4, %p2765_p3 }
  0x57   : > { %p2763_p13 = pneg %p2762_p11  ;;  %p2769_p12 = por %p2768_p2, %p2767_p8 }
  0x59   : > { %p2770_p6 = pnand %p2769_p12, %p2763_p13 }
  0x5b   : > { %2773 = shalt.err (!%p2770_p6)
}
  0x5c   : > { %s2774_s9 = scalar_lea.vmem %s3178_s0, 3840  ;;  %s2953_s4 = smov [#allocation6]  }
  0x5d   : > { %p2775_p10 = scmp.ne.s32.totalorder %s3178_s0, %s2774_s9  ;;  %s2779_s26 = sshll.u32 %s2953_s4, 4  ;;  %s2780_s26 = int_to_ptr.vmem [resolvable:$false] %s2779_s26 }
  0x5e   : > { %s2781_s25 = scalar_lea.vmem %s2780_s26, 7680  ;;  %p2782_p0 = scmp.lt.s32.totalorder %s3178_s0, %s2780_s26 }
  0x5f   : > { %p2777_p11 = pnand %p2775_p10, %p2761_p5  ;;  %p2783_p3 = scmp.lt.s32.totalorder %s2781_s25, %s2774_s9 }
  0x61   : > { %p2778_p1 = pneg %p2777_p11  ;;  %p2784_p4 = por %p2783_p3, %p2782_p0 }
  0x63   : > { %p2785_p8 = pnand %p2784_p4, %p2778_p1 }
  0x65   : > { %2788 = shalt.err (!%p2785_p8)
}
  0x66   : > { %s2954_s21 = smov 64   ;;  %s2955_s5 = smov 4  }
  0x67   : > { %2588 = dma.hbm_to_vmem [thread:$0]  (!%p3163_p9), %s3176_s30, 3840, %s3178_s0, %s3180_s6, %s2954_s21, %s2954_s21, %s2955_s5  }
  0x68   : > { %204 = sbr.rel (%p3113_p7) target bundleno = 1648 (0x670), region = 28  ;;  %s3211_s10 = sand.u32 (!%p3113_p7), 1, %s2923_s16  }
  0x69   : > { %s2425_s23 = sshll.u32 (!%p3113_p7), %s3211_s10, 6  ;;  %s207_s9 = scalar_lea.sflag (!%p3113_p7), [#allocation4], %s3211_s10 }
  0x6a   : > { %s3215_s4 = scalar_lea.vmem (!%p3113_p7), [#allocation3], %s2425_s23  ;;  %p3567_p6 = scmp.ne.s32.totalorder (!%p3113_p7), %s3559_s7, 0 }
  0x6f   : > { %2890 = dma.done.wait (%p3567_p6), %s207_s9, 1024  }
  0x70   : > { %2892 = vsyncadd (%p3567_p6), %s207_s9, 4294966272  ;;  %s215_s0 = sand.u32 1, %s2911_s13   ;;  %p3568_p7 = scmp.ne.s32.totalorder %s3563_s24, 0 }
  0x71   : > { %s2573_s29 = smul.u32 240, %s215_s0  ;;  %s216_s30 = scalar_lea.sflag [#allocation7], %s215_s0 }
  0x73   : > { %s3222_s8 = scalar_lea.vmem [#allocation6], %s2573_s29 }
  0x74   : > { %2894 = dma.done.wait (%p3568_p7), %s216_s30, 3840  }
  0x75   : > { %2896 = vsyncadd (%p3568_p7), %s216_s30, 4294963456  ;;  %s2427_s6 = sshll.u32 %s3211_s10, 5  ;;  %s3229_s26 = scalar_lea.vmem [#allocation8], %s2425_s23 }
  0x76   : > { %s3231_s25 = scalar_lea.vmem [#allocation9], %s2427_s6  ;;  %p2428_p0 = scmp.ne.s32.totalorder %s2931_s18, 0 }
  0x77   : > { %v260_v0 = vlaneseq (!%p2428_p0)  ;;  %v289_v1 = vld [vmem:[%s3215_s4] sm:$0xff] (!%p2428_p0)  ;;  %v290_v2 = vld [vmem:[%s3215_s4 + $0x8] sm:$0xff] (!%p2428_p0)  ;;  %v291_v3 = vld [vmem:[%s3215_s4 + $0x10] sm:$0xff] (!%p2428_p0)  ;;  %v2956_v4 = vmov (!%p2428_p0), 0.0  }
  0x78   : > { %259 = sbr.rel (%p2428_p0) target bundleno = 131 (0x83), region = 40  ;;  %281 = vst [vmem:[#allocation2 + $0x40] sm:$0xff] (!%p2428_p0), %v2956_v4  ;;  %282 = vst [vmem:[#allocation2 + $0x48] sm:$0xff] (!%p2428_p0), %v2956_v4  ;;  %v292_v5 = vld [vmem:[%s3215_s4 + $0x18] sm:$0xff] (!%p2428_p0)  ;;  %v293_v8 = vld [vmem:[%s3215_s4 + $0x20] sm:$0x3] (!%p2428_p0) }
  0x79   : > { %283 = vst [vmem:[#allocation2 + $0x50] sm:$0xff] (!%p2428_p0), %v2956_v4  ;;  %284 = vst [vmem:[#allocation2 + $0x58] sm:$0xff] (!%p2428_p0), %v2956_v4  ;;  %v261_v6 = vshrl.u32 (!%p2428_p0), %v260_v0, 7  ;;  %v294_v9 = vld [vmem:[%s3215_s4 + $0x28] sm:$0x3] (!%p2428_p0) }
  0x7a   : > { %285 = vst [vmem:[#allocation2 + $0x60] sm:$0xff] (!%p2428_p0), %v2956_v4  ;;  %286 = vst [vmem:[#allocation2 + $0x68] sm:$0xff] (!%p2428_p0), %v2956_v4  ;;  %v295_v10 = vld [vmem:[%s3215_s4 + $0x30] sm:$0x3] (!%p2428_p0)  ;;  %v296_v11 = vld [vmem:[%s3215_s4 + $0x38] sm:$0x3] (!%p2428_p0) }
  0x7b   : > { %287 = vst [vmem:[#allocation2 + $0x70] sm:$0xff] (!%p2428_p0), %v2956_v4  ;;  %288 = vst [vmem:[#allocation2 + $0x78] sm:$0xff] (!%p2428_p0), %v2956_v4  ;;  %v262_v7 = vadd.s32 (!%p2428_p0), 8, %v261_v6 }
  0x7c   : > { %297 = vst [vmem:[#allocation2] sm:$0xff] (!%p2428_p0), %v289_v1  ;;  %298 = vst [vmem:[#allocation2 + $0x8] sm:$0xff] (!%p2428_p0), %v290_v2 }
  0x7d   : > { %299 = vst [vmem:[#allocation2 + $0x10] sm:$0xff] (!%p2428_p0), %v291_v3  ;;  %300 = vst [vmem:[#allocation2 + $0x18] sm:$0xff] (!%p2428_p0), %v292_v5  ;;  %vm266_vm0 = vcmp.eq.s32.totalorder (!%p2428_p0), %v262_v7, 10 }
  0x7e   : > { %v270_v12 = vsel (!%p2428_p0), %vm266_vm0, 1.0, %v2956_v4 }
  0x7f   : > { %277 = vst [vmem:[#allocation2 + $0x20] sm:$0xff] %v270_v12  ;;  %278 = vst [vmem:[#allocation2 + $0x28] sm:$0xff] %v270_v12 }
  0x80   : > { %279 = vst [vmem:[#allocation2 + $0x30] sm:$0xff] %v270_v12  ;;  %280 = vst [vmem:[#allocation2 + $0x38] sm:$0xff] %v270_v12 }
  0x81   : > { %301 = vst [vmem:[#allocation2 + $0x20] sm:$0x3] %v293_v8  ;;  %302 = vst [vmem:[#allocation2 + $0x28] sm:$0x3] %v294_v9 }
  0x82   : > { %303 = vst [vmem:[#allocation2 + $0x30] sm:$0x3] %v295_v10  ;;  %304 = vst [vmem:[#allocation2 + $0x38] sm:$0x3] %v296_v11 }
  0x83 PF: > { %v2699_v13 = vld [vmem:[%s3222_s8] sm:$0xff]   ;;  %v2957_v17 = vmov 0   ;;  %v2700_v27 = vld [vmem:[%s3222_s8 + $0x48] sm:$0xff]   ;;  %v2702_v29 = vld [vmem:[%s3222_s8 + $0x10] sm:$0xff]   ;;  %vm349_vm1 = vcmask 130048   ;;  %vm2960_vm3 = vmmov 1  }
  0x84   : > { %406 = vmatprep.mubr.bf16.mxu0 %v2957_v17  ;;  %519 = vmatprep.mubr.bf16.mxu1 %v2957_v17  ;;  %v2701_v28 = vld [vmem:[%s3222_s8 + $0x8] sm:$0xff]   ;;  %v2703_v30 = vld [vmem:[%s3222_s8 + $0x18] sm:$0xff]   ;;  %v2704_v31 = vld [vmem:[%s3222_s8 + $0x20] sm:$0xff]   ;;  %p2559_p1 = scmp.ne.s32.totalorder %s2931_s18, 5 }
  0x85   : > { %333 = vxpose.xlu0.c.b16.start.end [1/1] (short) %v2699_v13, 128  ;;  %768 = vxpose.xlu1.c.b16.start [1/8] %v2701_v28, 128  ;;  %v2705_v32 = vld [vmem:[%s3222_s8 + $0x28] sm:$0xff]   ;;  %v2706_v33 = vld [vmem:[%s3222_s8 + $0x30] sm:$0xff]   ;;  %v2707_v34 = vld [vmem:[%s3222_s8 + $0x38] sm:$0xff]  }
  0x86   : > { %v2708_v35 = vld [vmem:[%s3222_s8 + $0x40] sm:$0xff]   ;;  %v2709_v47 = vld [vmem:[%s3222_s8 + $0x90] sm:$0xff]   ;;  %v2711_v53 = vld [vmem:[%s3222_s8 + $0x58] sm:$0xff]  }
  0x87   : > { %v314_v14 = vld [vmem:[#allocation2 + $0x8] sm:$0xff]  ;;  %v313_v20 = vld [vmem:[#allocation2] sm:$0xff] }
  0x88   : > { %v316_v16 = vld [vmem:[#allocation2 + $0x18] sm:$0xff]  ;;  %v315_v24 = vld [vmem:[#allocation2 + $0x10] sm:$0xff] }
  0x89   : > { %v320_v19 = vld [vmem:[#allocation2 + $0x38] sm:$0xff]  ;;  %v319_v25 = vld [vmem:[#allocation2 + $0x30] sm:$0xff]  ;;  %769 = vxpose.xlu1.c.b16.cont [2/8] %v2702_v29, 128 }
  0x8a   : > { %v318_v15 = vld [vmem:[#allocation2 + $0x28] sm:$0xff]  ;;  %v317_v21 = vld [vmem:[#allocation2 + $0x20] sm:$0xff]  ;;  %v324_v22 = vpack.c.bf16 %v320_v19, %v316_v16  ;;  %v323_v26 = vpack.c.bf16 %v319_v25, %v315_v24 }
  0x8b   : > { %v322_v18 = vpack.c.bf16 %v318_v15, %v314_v14  ;;  %v321_v23 = vpack.c.bf16 %v317_v21, %v313_v20  ;;  %v2710_v48 = vld [vmem:[%s3222_s8 + $0x50] sm:$0xff]   ;;  %v2712_v4 = vld [vmem:[%s3222_s8 + $0x60] sm:$0xff]   ;;  %v2713_v11 = vld [vmem:[%s3222_s8 + $0x68] sm:$0xff]  }
  0x8c   : > { %487 = vmatprep.subr.bf16.mxu1 %v324_v22 }
  0x8d   : > { %374 = vmatprep.subr.bf16.mxu0 %v322_v18  ;;  %488 = vmatpush1.bf16.msra.mxu1 %v323_v26 }
  0x8e   : > { %375 = vmatpush1.bf16.msra.mxu0 %v321_v23  ;;  %770 = vxpose.xlu1.c.b16.cont [3/8] %v2703_v30, 128 }
  0x92   : > { %771 = vxpose.xlu1.c.b16.cont [4/8] %v2704_v31, 128 }
  0x96   : > { %772 = vxpose.xlu1.c.b16.cont [5/8] %v2705_v32, 128 }
  0x9a   : > { %773 = vxpose.xlu1.c.b16.cont [6/8] %v2706_v33, 128 }
  0x9e   : > { %774 = vxpose.xlu1.c.b16.cont [7/8] %v2707_v34, 128  ;;  %v2715_v34 = vld [vmem:[%s3222_s8 + $0x78] sm:$0xff]  }
  0xa2   : > { %784 = vxpose.xlu0.c.b16.start.end [1/1] (short) %v2700_v27, 128  ;;  %775 = vxpose.xlu1.c.b16.end [8/8] %v2708_v35, 128  ;;  %v2714_v27 = vld [vmem:[%s3222_s8 + $0x70] sm:$0xff]  }
  0xa6   : > { %1234 = vxpose.xlu1.c.b16.start.end [1/1] (short) %v2709_v47, 128 }
  0xbf   : > { %1218 = vxpose.xlu0.c.b16.start [1/8] %v2710_v48, 128 }
  0xc3   : > { %1219 = vxpose.xlu0.c.b16.cont [2/8] %v2711_v53, 128 }
  0xc7   : > { %1220 = vxpose.xlu0.c.b16.cont [3/8] %v2712_v4, 128 }
  0xcb   : > { %1221 = vxpose.xlu0.c.b16.cont [4/8] %v2713_v11, 128 }
  0xcf   : > { %1222 = vxpose.xlu0.c.b16.cont [5/8] %v2714_v27, 128 }
  0xd3   : > { %1223 = vxpose.xlu0.c.b16.cont [6/8] %v2715_v34, 128 }
  0xeb   : > { %v341_v36 = vpop.trf.xlu0 }
  0xec   : > { %2430 = vmatmul.mubr.msk.bf16.vlgmr.msra.gmra.mrb[0].mxu0 %vm349_vm1, %v341_v36  ;;  %2438 = vmatmul.mubr.msk.bf16.vlgmr.msra.gmra.mrb[0].mxu1 %vm349_vm1, %v341_v36 }
  0xed   : > { %416 = vmatprep.mubr.bf16.mxu0 %v2957_v17  ;;  %529 = vmatprep.mubr.bf16.mxu1 %v2957_v17 }
  0xef   : > { %v342_v37 = vpop.trf.xlu0 }
  0xf3   : > { %v343_v38 = vpop.trf.xlu0 }
  0xf4   : > { %2431 = vmatmul.mubr.msk.bf16.gmra.mrb[4].mxu0 %vm349_vm1, %v342_v37  ;;  %2439 = vmatmul.mubr.msk.bf16.gmra.mrb[4].mxu1 %vm349_vm1, %v342_v37 }
  0xf5   : > { %426 = vmatprep.mubr.bf16.mxu0 %v2957_v17  ;;  %539 = vmatprep.mubr.bf16.mxu1 %v2957_v17 }
  0xf7   : > { %v344_v39 = vpop.trf.xlu0 }
  0xfb   : > { %v345_v40 = vpop.trf.xlu0 }
  0xfc   : > { %2432 = vmatmul.mubr.msk.bf16.gmra.mrb[8].mxu0 %vm349_vm1, %v343_v38  ;;  %2440 = vmatmul.mubr.msk.bf16.gmra.mrb[8].mxu1 %vm349_vm1, %v343_v38 }
  0xfd   : > { %436 = vmatprep.mubr.bf16.mxu0 %v2957_v17  ;;  %549 = vmatprep.mubr.bf16.mxu1 %v2957_v17 }
  0xff   : > { %v346_v41 = vpop.trf.xlu0 }
 0x103   : > { %v347_v42 = vpop.trf.xlu0 }
 0x104   : > { %2433 = vmatmul.mubr.msk.bf16.gmra.mrb[12].mxu0 %vm349_vm1, %v344_v39  ;;  %2441 = vmatmul.mubr.msk.bf16.gmra.mrb[12].mxu1 %vm349_vm1, %v344_v39 }
 0x105   : > { %446 = vmatprep.mubr.bf16.mxu0 %v2957_v17  ;;  %559 = vmatprep.mubr.bf16.mxu1 %v2957_v17 }
 0x107   : > { %v348_v43 = vpop.trf.xlu0 }
 0x10b   : > { %v792_v44 = vpop.trf.xlu0 }
 0x10c   : > { %2434 = vmatmul.mubr.msk.bf16.gmra.mrb[16].mxu0 %vm349_vm1, %v345_v40  ;;  %2442 = vmatmul.mubr.msk.bf16.gmra.mrb[16].mxu1 %vm349_vm1, %v345_v40 }
 0x10d   : > { %456 = vmatprep.mubr.bf16.mxu0 %v2957_v17  ;;  %569 = vmatprep.mubr.bf16.mxu1 %v2957_v17 }
 0x114   : > { %2435 = vmatmul.mubr.msk.bf16.gmra.mrb[20].mxu0 %vm349_vm1, %v346_v41  ;;  %2443 = vmatmul.mubr.msk.bf16.gmra.mrb[20].mxu1 %vm349_vm1, %v346_v41 }
 0x115   : > { %466 = vmatprep.mubr.bf16.mxu0 %v2957_v17  ;;  %579 = vmatprep.mubr.bf16.mxu1 %v2957_v17 }
 0x11c   : > { %2436 = vmatmul.mubr.msk.bf16.gmra.mrb[24].mxu0 %vm349_vm1, %v347_v42  ;;  %2444 = vmatmul.mubr.msk.bf16.gmra.mrb[24].mxu1 %vm349_vm1, %v347_v42 }
 0x11d   : > { %476 = vmatprep.mubr.bf16.mxu0 %v2957_v17  ;;  %589 = vmatprep.mubr.bf16.mxu1 %v2957_v17 }
 0x124   : > { %2437 = vmatmul.mubr.msk.bf16.gmra.mrb[28].mxu0 %vm349_vm1, %v348_v43  ;;  %2445 = vmatmul.mubr.msk.bf16.gmra.mrb[28].mxu1 %vm349_vm1, %v348_v43 }
 0x125   : > { %2461 = vmatprep.mubr.msk.bf16.mxu0 %vm349_vm1, %v792_v44  ;;  %2475 = vmatprep.mubr.msk.bf16.mxu1 %vm349_vm1, %v792_v44 }
 0x1bf   : > { %v408_v45 = vpop.f32.mrb[0].mxu0  ;;  %v521_v46 = vpop.f32.mrb[0].mxu1 }
 0x1c0   : > { %v410_v49 = vpop.f32.mrb[1].mxu0  ;;  %v523_v50 = vpop.f32.mrb[1].mxu1  ;;  %v600_v54 = vmax.f32 %v408_v45, 0.0  ;;  %v602_v55 = vmax.f32 %v521_v46, 0.0 }
 0x1c1   : > { %v412_v51 = vpop.f32.mrb[2].mxu0  ;;  %v525_v52 = vpop.f32.mrb[2].mxu1  ;;  %v601_v60 = vmax.f32 %v410_v49, 0.0  ;;  %v603_v61 = vmax.f32 %v523_v50, 0.0  ;;  %v2716_v49 = vld [vmem:[%s3222_s8 + $0x80] sm:$0xff]  }
 0x1c2   : > { %v604_v56 = vmax.f32 %v412_v51, 0.0  ;;  %v606_v57 = vmax.f32 %v525_v52, 0.0  ;;  %v414_v58 = vpop.f32.mrb[3].mxu0  ;;  %v527_v59 = vpop.f32.mrb[3].mxu1  ;;  %1224 = vxpose.xlu0.c.b16.cont [7/8] %v2716_v49, 128 }
 0x1c3   : > { %v605_v62 = vmax.f32 %v414_v58, 0.0  ;;  %v607_v63 = vmax.f32 %v527_v59, 0.0 }
 0x1c4   : > { %v664_v0 = vpack.c.bf16 %v604_v56, %v600_v54  ;;  %v666_v1 = vpack.c.bf16 %v606_v57, %v602_v55  ;;  %v2717_v56 = vld [vmem:[%s3222_s8 + $0x88] sm:$0xff]  }
 0x1c5   : > { %v665_v2 = vpack.c.bf16 %v605_v62, %v601_v60  ;;  %v667_v3 = vpack.c.bf16 %v607_v63, %v603_v61 }
 0x1c6   : > { %1225 = vxpose.xlu0.c.b16.end [8/8] %v2717_v56, 128 }
 0x1c7   : > { %v418_v5 = vpop.f32.mrb[4].mxu0  ;;  %v531_v6 = vpop.f32.mrb[4].mxu1  ;;  %824 = vmatprep.subr.bf16.mxu0 %v665_v2  ;;  %937 = vmatprep.subr.bf16.mxu1 %v667_v3 }
 0x1c8   : > { %v420_v7 = vpop.f32.mrb[5].mxu0  ;;  %v533_v8 = vpop.f32.mrb[5].mxu1  ;;  %825 = vmatpush1.bf16.msra.mxu0 %v664_v0  ;;  %938 = vmatpush1.bf16.msra.mxu1 %v666_v1  ;;  %v608_v12 = vmax.f32 %v418_v5, 0.0  ;;  %v610_v13 = vmax.f32 %v531_v6, 0.0 }
 0x1c9   : > { %v422_v9 = vpop.f32.mrb[6].mxu0  ;;  %v535_v10 = vpop.f32.mrb[6].mxu1  ;;  %v609_v19 = vmax.f32 %v420_v7, 0.0  ;;  %v611_v20 = vmax.f32 %v533_v8, 0.0 }
 0x1ca   : > { %v612_v14 = vmax.f32 %v422_v9, 0.0  ;;  %v614_v15 = vmax.f32 %v535_v10, 0.0  ;;  %v424_v16 = vpop.f32.mrb[7].mxu0  ;;  %v537_v18 = vpop.f32.mrb[7].mxu1 }
 0x1cb   : > { %v613_v21 = vmax.f32 %v424_v16, 0.0  ;;  %v615_v22 = vmax.f32 %v537_v18, 0.0 }
 0x1cc   : > { %v668_v23 = vpack.c.bf16 %v612_v14, %v608_v12  ;;  %v670_v24 = vpack.c.bf16 %v614_v15, %v610_v13 }
 0x1cd   : > { %v669_v25 = vpack.c.bf16 %v613_v21, %v609_v19  ;;  %v671_v26 = vpack.c.bf16 %v615_v22, %v611_v20 }
 0x1cf   : > { %v428_v28 = vpop.f32.mrb[8].mxu0  ;;  %v541_v29 = vpop.f32.mrb[8].mxu1  ;;  %826 = vmatprep.subr.bf16.mxu0 %v669_v25  ;;  %939 = vmatprep.subr.bf16.mxu1 %v671_v26 }
 0x1d0   : > { %v430_v30 = vpop.f32.mrb[9].mxu0  ;;  %v543_v31 = vpop.f32.mrb[9].mxu1  ;;  %827 = vmatpush1.bf16.msra.mxu0 %v668_v23  ;;  %940 = vmatpush1.bf16.msra.mxu1 %v670_v24  ;;  %v616_v35 = vmax.f32 %v428_v28, 0.0  ;;  %v618_v36 = vmax.f32 %v541_v29, 0.0 }
 0x1d1   : > { %v432_v32 = vpop.f32.mrb[10].mxu0  ;;  %v545_v33 = vpop.f32.mrb[10].mxu1  ;;  %v617_v41 = vmax.f32 %v430_v30, 0.0  ;;  %v619_v42 = vmax.f32 %v543_v31, 0.0 }
 0x1d2   : > { %v620_v37 = vmax.f32 %v432_v32, 0.0  ;;  %v622_v38 = vmax.f32 %v545_v33, 0.0  ;;  %v434_v39 = vpop.f32.mrb[11].mxu0  ;;  %v547_v40 = vpop.f32.mrb[11].mxu1 }
 0x1d3   : > { %v621_v43 = vmax.f32 %v434_v39, 0.0  ;;  %v623_v44 = vmax.f32 %v547_v40, 0.0 }
 0x1d4   : > { %v672_v45 = vpack.c.bf16 %v620_v37, %v616_v35  ;;  %v674_v46 = vpack.c.bf16 %v622_v38, %v618_v36 }
 0x1d5   : > { %v673_v47 = vpack.c.bf16 %v621_v43, %v617_v41  ;;  %v675_v48 = vpack.c.bf16 %v623_v44, %v619_v42 }
 0x1d7   : > { %v438_v50 = vpop.f32.mrb[12].mxu0  ;;  %v551_v51 = vpop.f32.mrb[12].mxu1  ;;  %828 = vmatprep.subr.bf16.mxu0 %v673_v47  ;;  %941 = vmatprep.subr.bf16.mxu1 %v675_v48 }
 0x1d8   : > { %v440_v52 = vpop.f32.mrb[13].mxu0  ;;  %v553_v53 = vpop.f32.mrb[13].mxu1  ;;  %829 = vmatpush1.bf16.msra.mxu0 %v672_v45  ;;  %942 = vmatpush1.bf16.msra.mxu1 %v674_v46  ;;  %v624_v57 = vmax.f32 %v438_v50, 0.0  ;;  %v626_v58 = vmax.f32 %v551_v51, 0.0 }
 0x1d9   : > { %v442_v54 = vpop.f32.mrb[14].mxu0  ;;  %v555_v55 = vpop.f32.mrb[14].mxu1  ;;  %v625_v63 = vmax.f32 %v440_v52, 0.0  ;;  %v627_v0 = vmax.f32 %v553_v53, 0.0 }
 0x1da   : > { %v628_v59 = vmax.f32 %v442_v54, 0.0  ;;  %v630_v60 = vmax.f32 %v555_v55, 0.0  ;;  %v444_v61 = vpop.f32.mrb[15].mxu0  ;;  %v557_v62 = vpop.f32.mrb[15].mxu1  ;;  %v305_v54 = vlaneseq }
 0x1db   : > { %v629_v1 = vmax.f32 %v444_v61, 0.0  ;;  %v631_v2 = vmax.f32 %v557_v62, 0.0 }
 0x1dc   : > { %v676_v3 = vpack.c.bf16 %v628_v59, %v624_v57  ;;  %v678_v4 = vpack.c.bf16 %v630_v60, %v626_v58 }
 0x1dd   : > { %v677_v5 = vpack.c.bf16 %v629_v1, %v625_v63  ;;  %v679_v6 = vpack.c.bf16 %v631_v2, %v627_v0 }
 0x1df   : > { %v448_v7 = vpop.f32.mrb[16].mxu0  ;;  %v561_v8 = vpop.f32.mrb[16].mxu1  ;;  %830 = vmatprep.subr.bf16.mxu0 %v677_v5  ;;  %943 = vmatprep.subr.bf16.mxu1 %v679_v6  ;;  %v306_v5 = vshrl.u32 %v305_v54, 7 }
 0x1e0   : > { %v450_v9 = vpop.f32.mrb[17].mxu0  ;;  %v563_v10 = vpop.f32.mrb[17].mxu1  ;;  %831 = vmatpush1.bf16.msra.mxu0 %v676_v3  ;;  %944 = vmatpush1.bf16.msra.mxu1 %v678_v4  ;;  %v632_v13 = vmax.f32 %v448_v7, 0.0  ;;  %v634_v14 = vmax.f32 %v561_v8, 0.0 }
 0x1e1   : > { %v452_v11 = vpop.f32.mrb[18].mxu0  ;;  %v565_v12 = vpop.f32.mrb[18].mxu1  ;;  %v633_v20 = vmax.f32 %v450_v9, 0.0  ;;  %v635_v21 = vmax.f32 %v563_v10, 0.0  ;;  %vm308_vm2 = vcmp.eq.s32.totalorder %v306_v5, 0 }
 0x1e2   : > { %v636_v15 = vmax.f32 %v452_v11, 0.0  ;;  %v638_v16 = vmax.f32 %v565_v12, 0.0  ;;  %v454_v18 = vpop.f32.mrb[19].mxu0  ;;  %v567_v19 = vpop.f32.mrb[19].mxu1  ;;  %vm3298_vm4 = vmpackc.low %vm2960_vm3, %vm308_vm2 }
 0x1e3   : > { %v637_v22 = vmax.f32 %v454_v18, 0.0  ;;  %v639_v23 = vmax.f32 %v567_v19, 0.0 }
 0x1e4   : > { %v680_v24 = vpack.c.bf16 %v636_v15, %v632_v13  ;;  %v682_v25 = vpack.c.bf16 %v638_v16, %v634_v14 }
 0x1e5   : > { %v681_v26 = vpack.c.bf16 %v637_v22, %v633_v20  ;;  %v683_v27 = vpack.c.bf16 %v639_v23, %v635_v21 }
 0x1e7   : > { %v458_v28 = vpop.f32.mrb[20].mxu0  ;;  %v571_v29 = vpop.f32.mrb[20].mxu1  ;;  %832 = vmatprep.subr.bf16.mxu0 %v681_v26  ;;  %945 = vmatprep.subr.bf16.mxu1 %v683_v27  ;;  %v2958_v27 = vmov 0.0  }
 0x1e8   : > { %v460_v30 = vpop.f32.mrb[21].mxu0  ;;  %v573_v31 = vpop.f32.mrb[21].mxu1  ;;  %833 = vmatpush1.bf16.msra.mxu0 %v680_v24  ;;  %946 = vmatpush1.bf16.msra.mxu1 %v682_v25  ;;  %v640_v34 = vmax.f32 %v458_v28, 0.0  ;;  %v642_v35 = vmax.f32 %v571_v29, 0.0  ;;  %v2959_v28 = vmov 1.0  }
 0x1e9   : > { %v462_v32 = vpop.f32.mrb[22].mxu0  ;;  %v575_v33 = vpop.f32.mrb[22].mxu1  ;;  %v641_v40 = vmax.f32 %v460_v30, 0.0  ;;  %v643_v41 = vmax.f32 %v573_v31, 0.0  ;;  %v3295_v29 = vpack.c.bf16 %v2958_v27, %v2959_v28 }
 0x1ea   : > { %v644_v36 = vmax.f32 %v462_v32, 0.0  ;;  %v646_v37 = vmax.f32 %v575_v33, 0.0  ;;  %v464_v38 = vpop.f32.mrb[23].mxu0  ;;  %v577_v39 = vpop.f32.mrb[23].mxu1 }
 0x1eb   : > { %v645_v42 = vmax.f32 %v464_v38, 0.0  ;;  %v647_v43 = vmax.f32 %v577_v39, 0.0  ;;  %v776_v31 = vpop.trf.xlu1  ;;  %v793_v32 = vpop.trf.xlu0 }
 0x1ec   : > { %v684_v44 = vpack.c.bf16 %v644_v36, %v640_v34  ;;  %v686_v45 = vpack.c.bf16 %v646_v37, %v642_v35 }
 0x1ed   : > { %v685_v46 = vpack.c.bf16 %v645_v42, %v641_v40  ;;  %v687_v47 = vpack.c.bf16 %v647_v43, %v643_v41 }
 0x1ef   : > { %v468_v48 = vpop.f32.mrb[24].mxu0  ;;  %v581_v49 = vpop.f32.mrb[24].mxu1  ;;  %834 = vmatprep.subr.bf16.mxu0 %v685_v46  ;;  %947 = vmatprep.subr.bf16.mxu1 %v687_v47 }
 0x1f0   : > { %v470_v50 = vpop.f32.mrb[25].mxu0  ;;  %v583_v51 = vpop.f32.mrb[25].mxu1  ;;  %835 = vmatpush1.bf16.msra.mxu0 %v684_v44  ;;  %948 = vmatpush1.bf16.msra.mxu1 %v686_v45  ;;  %v648_v55 = vmax.f32 %v468_v48, 0.0  ;;  %v650_v56 = vmax.f32 %v581_v49, 0.0  ;;  %v2718_v49 = vld [vmem:[%s3222_s8 + $0xd8] sm:$0xff]  }
 0x1f1   : > { %v472_v52 = vpop.f32.mrb[26].mxu0  ;;  %v585_v53 = vpop.f32.mrb[26].mxu1  ;;  %v649_v61 = vmax.f32 %v470_v50, 0.0  ;;  %v651_v62 = vmax.f32 %v583_v51, 0.0  ;;  %1684 = vxpose.xlu1.c.b16.start.end [1/1] (short) %v2718_v49, 128 }
 0x1f2   : > { %v652_v57 = vmax.f32 %v472_v52, 0.0  ;;  %v654_v58 = vmax.f32 %v585_v53, 0.0  ;;  %v474_v59 = vpop.f32.mrb[27].mxu0  ;;  %v587_v60 = vpop.f32.mrb[27].mxu1 }
 0x1f3   : > { %v653_v63 = vmax.f32 %v474_v59, 0.0  ;;  %v655_v0 = vmax.f32 %v587_v60, 0.0  ;;  %v777_v33 = vpop.trf.xlu1  ;;  %v794_v34 = vpop.trf.xlu0 }
 0x1f4   : > { %v688_v1 = vpack.c.bf16 %v652_v57, %v648_v55  ;;  %v690_v2 = vpack.c.bf16 %v654_v58, %v650_v56 }
 0x1f5   : > { %v689_v3 = vpack.c.bf16 %v653_v63, %v649_v61  ;;  %v691_v4 = vpack.c.bf16 %v655_v0, %v651_v62 }
 0x1f7   : > { %v478_v6 = vpop.f32.mrb[28].mxu0  ;;  %v591_v7 = vpop.f32.mrb[28].mxu1  ;;  %836 = vmatprep.subr.bf16.mxu0 %v689_v3  ;;  %949 = vmatprep.subr.bf16.mxu1 %v691_v4 }
 0x1f8   : > { %v480_v8 = vpop.f32.mrb[29].mxu0  ;;  %v593_v9 = vpop.f32.mrb[29].mxu1  ;;  %837 = vmatpush1.bf16.msra.mxu0 %v688_v1  ;;  %950 = vmatpush1.bf16.msra.mxu1 %v690_v2  ;;  %v656_v12 = vmax.f32 %v478_v6, 0.0  ;;  %v658_v13 = vmax.f32 %v591_v7, 0.0 }
 0x1f9   : > { %v482_v10 = vpop.f32.mrb[30].mxu0  ;;  %v595_v11 = vpop.f32.mrb[30].mxu1  ;;  %v657_v19 = vmax.f32 %v480_v8, 0.0  ;;  %v659_v20 = vmax.f32 %v593_v9, 0.0 }
 0x1fa   : > { %v660_v14 = vmax.f32 %v482_v10, 0.0  ;;  %v662_v15 = vmax.f32 %v595_v11, 0.0  ;;  %v484_v16 = vpop.f32.mrb[31].mxu0  ;;  %v597_v18 = vpop.f32.mrb[31].mxu1 }
 0x1fb   : > { %v661_v21 = vmax.f32 %v484_v16, 0.0  ;;  %v663_v22 = vmax.f32 %v597_v18, 0.0  ;;  %v778_v35 = vpop.trf.xlu1  ;;  %v795_v36 = vpop.trf.xlu0 }
 0x1fc   : > { %v692_v23 = vpack.c.bf16 %v660_v14, %v656_v12  ;;  %v694_v24 = vpack.c.bf16 %v662_v15, %v658_v13 }
 0x1fd   : > { %v693_v25 = vpack.c.bf16 %v661_v21, %v657_v19  ;;  %v695_v26 = vpack.c.bf16 %v663_v22, %v659_v20 }
 0x1ff   : > { %838 = vmatprep.subr.bf16.mxu0 %v693_v25  ;;  %951 = vmatprep.subr.bf16.mxu1 %v695_v26  ;;  %v779_v37 = vpop.trf.xlu1  ;;  %v796_v38 = vpop.trf.xlu0 }
 0x200   : > { %839 = vmatpush1.bf16.msra.mxu0 %v692_v23  ;;  %952 = vmatpush1.bf16.msra.mxu1 %v694_v24 }
 0x201   : > { %2457 = vmatprep.subr.msk.bf16.mxu0 %vm3298_vm4, %v3295_v29  ;;  %2471 = vmatprep.subr.msk.bf16.mxu1 %vm3298_vm4, %v3295_v29 }
 0x203   : > { %v780_v39 = vpop.trf.xlu1  ;;  %v797_v40 = vpop.trf.xlu0 }
 0x204   : > { %2460 = vmatpush1.bf16.msk.msra.mxu0 %vm3298_vm4, %v3295_v29  ;;  %2474 = vmatpush1.bf16.msk.msra.mxu1 %vm3298_vm4, %v3295_v29 }
 0x207   : > { %857 = vmatmul.mubr.bf16.vlgmr.msra.gmra.mrb[32].mxu0 %v776_v31  ;;  %970 = vmatmul.mubr.bf16.vlgmr.msra.gmra.mrb[32].mxu1 %v776_v31  ;;  %v781_v41 = vpop.trf.xlu1  ;;  %v798_v42 = vpop.trf.xlu0 }
 0x208   : > { %2462 = vmatprep.mubr.msk.bf16.mxu0 %vm349_vm1, %v793_v32  ;;  %2476 = vmatprep.mubr.msk.bf16.mxu1 %vm349_vm1, %v793_v32 }
 0x20b   : > { %v782_v43 = vpop.trf.xlu1  ;;  %v799_v44 = vpop.trf.xlu0 }
 0x20f   : > { %867 = vmatmul.mubr.bf16.gmra.mrb[36].mxu0 %v777_v33  ;;  %980 = vmatmul.mubr.bf16.gmra.mrb[36].mxu1 %v777_v33  ;;  %v783_v45 = vpop.trf.xlu1 }
 0x210   : > { %2463 = vmatprep.mubr.msk.bf16.mxu0 %vm349_vm1, %v794_v34  ;;  %2477 = vmatprep.mubr.msk.bf16.mxu1 %vm349_vm1, %v794_v34 }
 0x213   : > { %v1242_v46 = vpop.trf.xlu1 }
 0x217   : > { %877 = vmatmul.mubr.bf16.gmra.mrb[40].mxu0 %v778_v35  ;;  %990 = vmatmul.mubr.bf16.gmra.mrb[40].mxu1 %v778_v35 }
 0x218   : > { %2464 = vmatprep.mubr.msk.bf16.mxu0 %vm349_vm1, %v795_v36  ;;  %2478 = vmatprep.mubr.msk.bf16.mxu1 %vm349_vm1, %v795_v36 }
 0x21f   : > { %887 = vmatmul.mubr.bf16.gmra.mrb[44].mxu0 %v779_v37  ;;  %1000 = vmatmul.mubr.bf16.gmra.mrb[44].mxu1 %v779_v37 }
 0x220   : > { %2465 = vmatprep.mubr.msk.bf16.mxu0 %vm349_vm1, %v796_v38  ;;  %2479 = vmatprep.mubr.msk.bf16.mxu1 %vm349_vm1, %v796_v38 }
 0x227   : > { %897 = vmatmul.mubr.bf16.gmra.mrb[48].mxu0 %v780_v39  ;;  %1010 = vmatmul.mubr.bf16.gmra.mrb[48].mxu1 %v780_v39 }
 0x228   : > { %2466 = vmatprep.mubr.msk.bf16.mxu0 %vm349_vm1, %v797_v40  ;;  %2480 = vmatprep.mubr.msk.bf16.mxu1 %vm349_vm1, %v797_v40 }
 0x22f   : > { %907 = vmatmul.mubr.bf16.gmra.mrb[52].mxu0 %v781_v41  ;;  %1020 = vmatmul.mubr.bf16.gmra.mrb[52].mxu1 %v781_v41 }
 0x230   : > { %2467 = vmatprep.mubr.msk.bf16.mxu0 %vm349_vm1, %v798_v42  ;;  %2481 = vmatprep.mubr.msk.bf16.mxu1 %vm349_vm1, %v798_v42 }
 0x237   : > { %917 = vmatmul.mubr.bf16.gmra.mrb[56].mxu0 %v782_v43  ;;  %1030 = vmatmul.mubr.bf16.gmra.mrb[56].mxu1 %v782_v43 }
 0x238   : > { %2468 = vmatprep.mubr.msk.bf16.mxu0 %vm349_vm1, %v799_v44  ;;  %2482 = vmatprep.mubr.msk.bf16.mxu1 %vm349_vm1, %v799_v44 }
 0x23f   : > { %927 = vmatmul.mubr.bf16.gmra.mrb[60].mxu0 %v783_v45  ;;  %1040 = vmatmul.mubr.bf16.gmra.mrb[60].mxu1 %v783_v45 }
 0x240   : > { %2498 = vmatprep.mubr.msk.bf16.mxu0 %vm349_vm1, %v1242_v46  ;;  %2512 = vmatprep.mubr.msk.bf16.mxu1 %vm349_vm1, %v1242_v46 }
 0x2da   : > { %v858_v47 = vpop.f32.mrb[32].mxu0  ;;  %v971_v48 = vpop.f32.mrb[32].mxu1 }
 0x2db   : > { %v860_v50 = vpop.f32.mrb[33].mxu0  ;;  %v973_v51 = vpop.f32.mrb[33].mxu1  ;;  %v1050_v54 = vmax.f32 %v858_v47, 0.0  ;;  %v1052_v55 = vmax.f32 %v971_v48, 0.0 }
 0x2dc   : > { %v862_v52 = vpop.f32.mrb[34].mxu0  ;;  %v975_v53 = vpop.f32.mrb[34].mxu1  ;;  %v1051_v60 = vmax.f32 %v860_v50, 0.0  ;;  %v1053_v61 = vmax.f32 %v973_v51, 0.0 }
 0x2dd   : > { %v1054_v56 = vmax.f32 %v862_v52, 0.0  ;;  %v1056_v57 = vmax.f32 %v975_v53, 0.0  ;;  %v864_v58 = vpop.f32.mrb[35].mxu0  ;;  %v977_v59 = vpop.f32.mrb[35].mxu1  ;;  %v2719_v53 = vld [vmem:[%s3222_s8 + $0x98] sm:$0xff]  }
 0x2de   : > { %v1055_v62 = vmax.f32 %v864_v58, 0.0  ;;  %v1057_v63 = vmax.f32 %v977_v59, 0.0  ;;  %1668 = vxpose.xlu1.c.b16.start [1/8] %v2719_v53, 128 }
 0x2df   : > { %v1114_v0 = vpack.c.bf16 %v1054_v56, %v1050_v54  ;;  %v1116_v1 = vpack.c.bf16 %v1056_v57, %v1052_v55 }
 0x2e0   : > { %v1115_v2 = vpack.c.bf16 %v1055_v62, %v1051_v60  ;;  %v1117_v3 = vpack.c.bf16 %v1057_v63, %v1053_v61 }
 0x2e2   : > { %v868_v4 = vpop.f32.mrb[36].mxu0  ;;  %v981_v5 = vpop.f32.mrb[36].mxu1  ;;  %1274 = vmatprep.subr.bf16.mxu0 %v1115_v2  ;;  %1387 = vmatprep.subr.bf16.mxu1 %v1117_v3 }
 0x2e3   : > { %v870_v6 = vpop.f32.mrb[37].mxu0  ;;  %v983_v7 = vpop.f32.mrb[37].mxu1  ;;  %1275 = vmatpush1.bf16.msra.mxu0 %v1114_v0  ;;  %1388 = vmatpush1.bf16.msra.mxu1 %v1116_v1  ;;  %v1058_v10 = vmax.f32 %v868_v4, 0.0  ;;  %v1060_v11 = vmax.f32 %v981_v5, 0.0  ;;  %v2720_v4 = vld [vmem:[%s3222_s8 + $0xa0] sm:$0xff]  }
 0x2e4   : > { %v872_v8 = vpop.f32.mrb[38].mxu0  ;;  %v985_v9 = vpop.f32.mrb[38].mxu1  ;;  %v1059_v16 = vmax.f32 %v870_v6, 0.0  ;;  %v1061_v18 = vmax.f32 %v983_v7, 0.0  ;;  %1669 = vxpose.xlu1.c.b16.cont [2/8] %v2720_v4, 128 }
 0x2e5   : > { %v1062_v12 = vmax.f32 %v872_v8, 0.0  ;;  %v1064_v13 = vmax.f32 %v985_v9, 0.0  ;;  %v874_v14 = vpop.f32.mrb[39].mxu0  ;;  %v987_v15 = vpop.f32.mrb[39].mxu1 }
 0x2e6   : > { %v1063_v19 = vmax.f32 %v874_v14, 0.0  ;;  %v1065_v20 = vmax.f32 %v987_v15, 0.0 }
 0x2e7   : > { %v1118_v21 = vpack.c.bf16 %v1062_v12, %v1058_v10  ;;  %v1120_v22 = vpack.c.bf16 %v1064_v13, %v1060_v11  ;;  %v2721_v11 = vld [vmem:[%s3222_s8 + $0xa8] sm:$0xff]  }
 0x2e8   : > { %v1119_v23 = vpack.c.bf16 %v1063_v19, %v1059_v16  ;;  %v1121_v24 = vpack.c.bf16 %v1065_v20, %v1061_v18  ;;  %1670 = vxpose.xlu1.c.b16.cont [3/8] %v2721_v11, 128 }
 0x2ea   : > { %v878_v25 = vpop.f32.mrb[40].mxu0  ;;  %v991_v26 = vpop.f32.mrb[40].mxu1  ;;  %1276 = vmatprep.subr.bf16.mxu0 %v1119_v23  ;;  %1389 = vmatprep.subr.bf16.mxu1 %v1121_v24 }
 0x2eb   : > { %v880_v27 = vpop.f32.mrb[41].mxu0  ;;  %v993_v28 = vpop.f32.mrb[41].mxu1  ;;  %1277 = vmatpush1.bf16.msra.mxu0 %v1118_v21  ;;  %1390 = vmatpush1.bf16.msra.mxu1 %v1120_v22  ;;  %v1066_v33 = vmax.f32 %v878_v25, 0.0  ;;  %v1068_v34 = vmax.f32 %v991_v26, 0.0 }
 0x2ec   : > { %v882_v31 = vpop.f32.mrb[42].mxu0  ;;  %v995_v32 = vpop.f32.mrb[42].mxu1  ;;  %v1067_v39 = vmax.f32 %v880_v27, 0.0  ;;  %v1069_v40 = vmax.f32 %v993_v28, 0.0  ;;  %v2722_v27 = vld [vmem:[%s3222_s8 + $0xb0] sm:$0xff]  }
 0x2ed   : > { %v1070_v35 = vmax.f32 %v882_v31, 0.0  ;;  %v1072_v36 = vmax.f32 %v995_v32, 0.0  ;;  %v884_v37 = vpop.f32.mrb[43].mxu0  ;;  %v997_v38 = vpop.f32.mrb[43].mxu1  ;;  %1671 = vxpose.xlu1.c.b16.cont [4/8] %v2722_v27, 128 }
 0x2ee   : > { %v1071_v41 = vmax.f32 %v884_v37, 0.0  ;;  %v1073_v42 = vmax.f32 %v997_v38, 0.0 }
 0x2ef   : > { %v1122_v43 = vpack.c.bf16 %v1070_v35, %v1066_v33  ;;  %v1124_v44 = vpack.c.bf16 %v1072_v36, %v1068_v34  ;;  %v2723_v36 = vld [vmem:[%s3222_s8 + $0xb8] sm:$0xff]  }
 0x2f0   : > { %v1123_v45 = vpack.c.bf16 %v1071_v41, %v1067_v39  ;;  %v1125_v46 = vpack.c.bf16 %v1073_v42, %v1069_v40 }
 0x2f1   : > { %1672 = vxpose.xlu1.c.b16.cont [5/8] %v2723_v36, 128 }
 0x2f2   : > { %v888_v47 = vpop.f32.mrb[44].mxu0  ;;  %v1001_v48 = vpop.f32.mrb[44].mxu1  ;;  %1278 = vmatprep.subr.bf16.mxu0 %v1123_v45  ;;  %1391 = vmatprep.subr.bf16.mxu1 %v1125_v46 }
 0x2f3   : > { %v890_v49 = vpop.f32.mrb[45].mxu0  ;;  %v1003_v50 = vpop.f32.mrb[45].mxu1  ;;  %1279 = vmatpush1.bf16.msra.mxu0 %v1122_v43  ;;  %1392 = vmatpush1.bf16.msra.mxu1 %v1124_v44  ;;  %v1074_v54 = vmax.f32 %v888_v47, 0.0  ;;  %v1076_v55 = vmax.f32 %v1001_v48, 0.0 }
 0x2f4   : > { %v892_v51 = vpop.f32.mrb[46].mxu0  ;;  %v1005_v52 = vpop.f32.mrb[46].mxu1  ;;  %v1075_v60 = vmax.f32 %v890_v49, 0.0  ;;  %v1077_v61 = vmax.f32 %v1003_v50, 0.0 }
 0x2f5   : > { %v1078_v56 = vmax.f32 %v892_v51, 0.0  ;;  %v1080_v57 = vmax.f32 %v1005_v52, 0.0  ;;  %v894_v58 = vpop.f32.mrb[47].mxu0  ;;  %v1007_v59 = vpop.f32.mrb[47].mxu1  ;;  %v2724_v51 = vld [vmem:[%s3222_s8 + $0xc0] sm:$0xff]  }
 0x2f6   : > { %v1079_v62 = vmax.f32 %v894_v58, 0.0  ;;  %v1081_v63 = vmax.f32 %v1007_v59, 0.0  ;;  %v2725_v58 = vld [vmem:[%s3222_s8 + $0xc8] sm:$0xff]   ;;  %1673 = vxpose.xlu1.c.b16.cont [6/8] %v2724_v51, 128 }
 0x2f7   : > { %v1126_v0 = vpack.c.bf16 %v1078_v56, %v1074_v54  ;;  %v1128_v1 = vpack.c.bf16 %v1080_v57, %v1076_v55 }
 0x2f8   : > { %v1127_v2 = vpack.c.bf16 %v1079_v62, %v1075_v60  ;;  %v1129_v3 = vpack.c.bf16 %v1081_v63, %v1077_v61 }
 0x2fa   : > { %v898_v5 = vpop.f32.mrb[48].mxu0  ;;  %v1011_v6 = vpop.f32.mrb[48].mxu1  ;;  %1280 = vmatprep.subr.bf16.mxu0 %v1127_v2  ;;  %1393 = vmatprep.subr.bf16.mxu1 %v1129_v3 }
 0x2fb   : > { %v900_v7 = vpop.f32.mrb[49].mxu0  ;;  %v1013_v8 = vpop.f32.mrb[49].mxu1  ;;  %1281 = vmatpush1.bf16.msra.mxu0 %v1126_v0  ;;  %1394 = vmatpush1.bf16.msra.mxu1 %v1128_v1  ;;  %v1082_v12 = vmax.f32 %v898_v5, 0.0  ;;  %v1084_v13 = vmax.f32 %v1011_v6, 0.0 }
 0x2fc   : > { %v902_v9 = vpop.f32.mrb[50].mxu0  ;;  %v1015_v10 = vpop.f32.mrb[50].mxu1  ;;  %v1083_v19 = vmax.f32 %v900_v7, 0.0  ;;  %v1085_v20 = vmax.f32 %v1013_v8, 0.0  ;;  %1674 = vxpose.xlu1.c.b16.cont [7/8] %v2725_v58, 128 }
 0x2fd   : > { %v1086_v14 = vmax.f32 %v902_v9, 0.0  ;;  %v1088_v15 = vmax.f32 %v1015_v10, 0.0  ;;  %v904_v16 = vpop.f32.mrb[51].mxu0  ;;  %v1017_v18 = vpop.f32.mrb[51].mxu1  ;;  %v2726_v9 = vld [vmem:[%s3222_s8 + $0xd0] sm:$0xff]  }
 0x2fe   : > { %v1087_v21 = vmax.f32 %v904_v16, 0.0  ;;  %v1089_v22 = vmax.f32 %v1017_v18, 0.0 }
 0x2ff   : > { %v1130_v23 = vpack.c.bf16 %v1086_v14, %v1082_v12  ;;  %v1132_v24 = vpack.c.bf16 %v1088_v15, %v1084_v13 }
 0x300   : > { %v1131_v25 = vpack.c.bf16 %v1087_v21, %v1083_v19  ;;  %v1133_v26 = vpack.c.bf16 %v1089_v22, %v1085_v20  ;;  %1675 = vxpose.xlu1.c.b16.end [8/8] %v2726_v9, 128 }
 0x302   : > { %v908_v28 = vpop.f32.mrb[52].mxu0  ;;  %v1021_v31 = vpop.f32.mrb[52].mxu1  ;;  %1282 = vmatprep.subr.bf16.mxu0 %v1131_v25  ;;  %1395 = vmatprep.subr.bf16.mxu1 %v1133_v26 }
 0x303   : > { %v910_v32 = vpop.f32.mrb[53].mxu0  ;;  %v1023_v33 = vpop.f32.mrb[53].mxu1  ;;  %1283 = vmatpush1.bf16.msra.mxu0 %v1130_v23  ;;  %1396 = vmatpush1.bf16.msra.mxu1 %v1132_v24  ;;  %v1090_v37 = vmax.f32 %v908_v28, 0.0  ;;  %v1092_v38 = vmax.f32 %v1021_v31, 0.0 }
 0x304   : > { %v912_v34 = vpop.f32.mrb[54].mxu0  ;;  %v1025_v35 = vpop.f32.mrb[54].mxu1  ;;  %v1091_v43 = vmax.f32 %v910_v32, 0.0  ;;  %v1093_v44 = vmax.f32 %v1023_v33, 0.0 }
 0x305   : > { %v1094_v39 = vmax.f32 %v912_v34, 0.0  ;;  %v1096_v40 = vmax.f32 %v1025_v35, 0.0  ;;  %v914_v41 = vpop.f32.mrb[55].mxu0  ;;  %v1027_v42 = vpop.f32.mrb[55].mxu1 }
 0x306   : > { %v1095_v45 = vmax.f32 %v914_v41, 0.0  ;;  %v1097_v46 = vmax.f32 %v1027_v42, 0.0  ;;  %v1226_v33 = vpop.trf.xlu0  ;;  %v1243_v34 = vpop.trf.xlu1 }
 0x307   : > { %v1134_v47 = vpack.c.bf16 %v1094_v39, %v1090_v37  ;;  %v1136_v48 = vpack.c.bf16 %v1096_v40, %v1092_v38 }
 0x308   : > { %v1135_v49 = vpack.c.bf16 %v1095_v45, %v1091_v43  ;;  %v1137_v50 = vpack.c.bf16 %v1097_v46, %v1093_v44 }
 0x30a   : > { %v918_v52 = vpop.f32.mrb[56].mxu0  ;;  %v1031_v53 = vpop.f32.mrb[56].mxu1  ;;  %1284 = vmatprep.subr.bf16.mxu0 %v1135_v49  ;;  %1397 = vmatprep.subr.bf16.mxu1 %v1137_v50 }
 0x30b   : > { %v920_v54 = vpop.f32.mrb[57].mxu0  ;;  %v1033_v55 = vpop.f32.mrb[57].mxu1  ;;  %1285 = vmatpush1.bf16.msra.mxu0 %v1134_v47  ;;  %1398 = vmatpush1.bf16.msra.mxu1 %v1136_v48  ;;  %v1098_v59 = vmax.f32 %v918_v52, 0.0  ;;  %v1100_v60 = vmax.f32 %v1031_v53, 0.0 }
 0x30c   : > { %v922_v56 = vpop.f32.mrb[58].mxu0  ;;  %v1035_v57 = vpop.f32.mrb[58].mxu1  ;;  %v1099_v1 = vmax.f32 %v920_v54, 0.0  ;;  %v1101_v2 = vmax.f32 %v1033_v55, 0.0 }
 0x30d   : > { %v1102_v61 = vmax.f32 %v922_v56, 0.0  ;;  %v1104_v62 = vmax.f32 %v1035_v57, 0.0  ;;  %v924_v63 = vpop.f32.mrb[59].mxu0  ;;  %v1037_v0 = vpop.f32.mrb[59].mxu1 }
 0x30e   : > { %v1103_v3 = vmax.f32 %v924_v63, 0.0  ;;  %v1105_v4 = vmax.f32 %v1037_v0, 0.0  ;;  %v1227_v35 = vpop.trf.xlu0  ;;  %v1244_v36 = vpop.trf.xlu1 }
 0x30f   : > { %v1138_v5 = vpack.c.bf16 %v1102_v61, %v1098_v59  ;;  %v1140_v6 = vpack.c.bf16 %v1104_v62, %v1100_v60 }
 0x310   : > { %v1139_v7 = vpack.c.bf16 %v1103_v3, %v1099_v1  ;;  %v1141_v8 = vpack.c.bf16 %v1105_v4, %v1101_v2 }
 0x312   : > { %v928_v10 = vpop.f32.mrb[60].mxu0  ;;  %v1041_v11 = vpop.f32.mrb[60].mxu1  ;;  %1286 = vmatprep.subr.bf16.mxu0 %v1139_v7  ;;  %1399 = vmatprep.subr.bf16.mxu1 %v1141_v8 }
 0x313   : > { %v930_v12 = vpop.f32.mrb[61].mxu0  ;;  %v1043_v13 = vpop.f32.mrb[61].mxu1  ;;  %1287 = vmatpush1.bf16.msra.mxu0 %v1138_v5  ;;  %1400 = vmatpush1.bf16.msra.mxu1 %v1140_v6  ;;  %v1106_v16 = vmax.f32 %v928_v10, 0.0  ;;  %v1108_v18 = vmax.f32 %v1041_v11, 0.0 }
 0x314   : > { %v932_v14 = vpop.f32.mrb[62].mxu0  ;;  %v1045_v15 = vpop.f32.mrb[62].mxu1  ;;  %v1107_v23 = vmax.f32 %v930_v12, 0.0  ;;  %v1109_v24 = vmax.f32 %v1043_v13, 0.0 }
 0x315   : > { %v1110_v19 = vmax.f32 %v932_v14, 0.0  ;;  %v1112_v20 = vmax.f32 %v1045_v15, 0.0  ;;  %v934_v21 = vpop.f32.mrb[63].mxu0  ;;  %v1047_v22 = vpop.f32.mrb[63].mxu1 }
 0x316   : > { %v1111_v25 = vmax.f32 %v934_v21, 0.0  ;;  %v1113_v26 = vmax.f32 %v1047_v22, 0.0  ;;  %v1228_v37 = vpop.trf.xlu0  ;;  %v1245_v38 = vpop.trf.xlu1 }
 0x317   : > { %v1142_v27 = vpack.c.bf16 %v1110_v19, %v1106_v16  ;;  %v1144_v28 = vpack.c.bf16 %v1112_v20, %v1108_v18 }
 0x318   : > { %v1143_v31 = vpack.c.bf16 %v1111_v25, %v1107_v23  ;;  %v1145_v32 = vpack.c.bf16 %v1113_v26, %v1109_v24 }
 0x31a   : > { %1288 = vmatprep.subr.bf16.mxu0 %v1143_v31  ;;  %1401 = vmatprep.subr.bf16.mxu1 %v1145_v32  ;;  %v1229_v39 = vpop.trf.xlu0  ;;  %v1246_v40 = vpop.trf.xlu1 }
 0x31b   : > { %1289 = vmatpush1.bf16.msra.mxu0 %v1142_v27  ;;  %1402 = vmatpush1.bf16.msra.mxu1 %v1144_v28 }
 0x31c   : > { %2494 = vmatprep.subr.msk.bf16.mxu0 %vm3298_vm4, %v3295_v29  ;;  %2508 = vmatprep.subr.msk.bf16.mxu1 %vm3298_vm4, %v3295_v29 }
 0x31e   : > { %v1230_v41 = vpop.trf.xlu0  ;;  %v1247_v42 = vpop.trf.xlu1 }
 0x31f   : > { %2497 = vmatpush1.bf16.msk.msra.mxu0 %vm3298_vm4, %v3295_v29  ;;  %2511 = vmatpush1.bf16.msk.msra.mxu1 %vm3298_vm4, %v3295_v29 }
 0x322   : > { %1307 = vmatmul.mubr.bf16.vlgmr.msra.gmra.mrb[64].mxu0 %v1226_v33  ;;  %1420 = vmatmul.mubr.bf16.vlgmr.msra.gmra.mrb[64].mxu1 %v1226_v33  ;;  %v1231_v43 = vpop.trf.xlu0  ;;  %v1248_v44 = vpop.trf.xlu1 }
 0x323   : > { %2499 = vmatprep.mubr.msk.bf16.mxu0 %vm349_vm1, %v1243_v34  ;;  %2513 = vmatprep.mubr.msk.bf16.mxu1 %vm349_vm1, %v1243_v34 }
 0x326   : > { %v1232_v45 = vpop.trf.xlu0  ;;  %v1249_v46 = vpop.trf.xlu1 }
 0x32a   : > { %1317 = vmatmul.mubr.bf16.gmra.mrb[68].mxu0 %v1227_v35  ;;  %1430 = vmatmul.mubr.bf16.gmra.mrb[68].mxu1 %v1227_v35  ;;  %v1233_v47 = vpop.trf.xlu0  ;;  %v1692_v48 = vpop.trf.xlu1 }
 0x32b   : > { %2500 = vmatprep.mubr.msk.bf16.mxu0 %vm349_vm1, %v1244_v36  ;;  %2514 = vmatprep.mubr.msk.bf16.mxu1 %vm349_vm1, %v1244_v36 }
 0x32e   : > { %v3367_v26 = vpop.trf.xlu1 }
 0x332   : > { %1327 = vmatmul.mubr.bf16.gmra.mrb[72].mxu0 %v1228_v37  ;;  %1440 = vmatmul.mubr.bf16.gmra.mrb[72].mxu1 %v1228_v37 }
 0x333   : > { %2501 = vmatprep.mubr.msk.bf16.mxu0 %vm349_vm1, %v1245_v38  ;;  %2515 = vmatprep.mubr.msk.bf16.mxu1 %vm349_vm1, %v1245_v38 }
 0x33a   : > { %1337 = vmatmul.mubr.bf16.gmra.mrb[76].mxu0 %v1229_v39  ;;  %1450 = vmatmul.mubr.bf16.gmra.mrb[76].mxu1 %v1229_v39 }
 0x33b   : > { %2502 = vmatprep.mubr.msk.bf16.mxu0 %vm349_vm1, %v1246_v40  ;;  %2516 = vmatprep.mubr.msk.bf16.mxu1 %vm349_vm1, %v1246_v40 }
 0x342   : > { %1347 = vmatmul.mubr.bf16.gmra.mrb[80].mxu0 %v1230_v41  ;;  %1460 = vmatmul.mubr.bf16.gmra.mrb[80].mxu1 %v1230_v41 }
 0x343   : > { %2503 = vmatprep.mubr.msk.bf16.mxu0 %vm349_vm1, %v1247_v42  ;;  %2517 = vmatprep.mubr.msk.bf16.mxu1 %vm349_vm1, %v1247_v42 }
 0x34a   : > { %1357 = vmatmul.mubr.bf16.gmra.mrb[84].mxu0 %v1231_v43  ;;  %1470 = vmatmul.mubr.bf16.gmra.mrb[84].mxu1 %v1231_v43 }
 0x34b   : > { %2504 = vmatprep.mubr.msk.bf16.mxu0 %vm349_vm1, %v1248_v44  ;;  %2518 = vmatprep.mubr.msk.bf16.mxu1 %vm349_vm1, %v1248_v44 }
 0x352   : > { %1367 = vmatmul.mubr.bf16.gmra.mrb[88].mxu0 %v1232_v45  ;;  %1480 = vmatmul.mubr.bf16.gmra.mrb[88].mxu1 %v1232_v45 }
 0x353   : > { %2505 = vmatprep.mubr.msk.bf16.mxu0 %vm349_vm1, %v1249_v46  ;;  %2519 = vmatprep.mubr.msk.bf16.mxu1 %vm349_vm1, %v1249_v46 }
 0x35a   : > { %1377 = vmatmul.mubr.bf16.gmra.mrb[92].mxu0 %v1233_v47  ;;  %1490 = vmatmul.mubr.bf16.gmra.mrb[92].mxu1 %v1233_v47 }
 0x35b   : > { %2535 = vmatprep.mubr.msk.bf16.mxu0 %vm349_vm1, %v1692_v48  ;;  %2549 = vmatprep.mubr.msk.bf16.mxu1 %vm349_vm1, %v1692_v48 }
 0x3f5   : > { %v1308_v49 = vpop.f32.mrb[64].mxu0  ;;  %v1421_v50 = vpop.f32.mrb[64].mxu1 }
 0x3f6   : > { %v1310_v51 = vpop.f32.mrb[65].mxu0  ;;  %v1423_v52 = vpop.f32.mrb[65].mxu1  ;;  %v1500_v55 = vmax.f32 %v1308_v49, 0.0  ;;  %v1502_v56 = vmax.f32 %v1421_v50, 0.0 }
 0x3f7   : > { %v1312_v53 = vpop.f32.mrb[66].mxu0  ;;  %v1425_v54 = vpop.f32.mrb[66].mxu1  ;;  %v1501_v61 = vmax.f32 %v1310_v51, 0.0  ;;  %v1503_v62 = vmax.f32 %v1423_v52, 0.0 }
 0x3f8   : > { %v1504_v57 = vmax.f32 %v1312_v53, 0.0  ;;  %v1506_v58 = vmax.f32 %v1425_v54, 0.0  ;;  %v1314_v59 = vpop.f32.mrb[67].mxu0  ;;  %v1427_v60 = vpop.f32.mrb[67].mxu1 }
 0x3f9   : > { %v1505_v63 = vmax.f32 %v1314_v59, 0.0  ;;  %v1507_v0 = vmax.f32 %v1427_v60, 0.0  ;;  %v3369_v49 = vpop.trf.xlu1 }
 0x3fa   : > { %v1564_v1 = vpack.c.bf16 %v1504_v57, %v1500_v55  ;;  %v1566_v2 = vpack.c.bf16 %v1506_v58, %v1502_v56 }
 0x3fb   : > { %v1565_v3 = vpack.c.bf16 %v1505_v63, %v1501_v61  ;;  %v1567_v4 = vpack.c.bf16 %v1507_v0, %v1503_v62 }
 0x3fd   : > { %v1318_v5 = vpop.f32.mrb[68].mxu0  ;;  %v1431_v6 = vpop.f32.mrb[68].mxu1  ;;  %1724 = vmatprep.subr.bf16.mxu0 %v1565_v3  ;;  %1837 = vmatprep.subr.bf16.mxu1 %v1567_v4 }
 0x3fe   : > { %v1320_v7 = vpop.f32.mrb[69].mxu0  ;;  %v1433_v8 = vpop.f32.mrb[69].mxu1  ;;  %1725 = vmatpush1.bf16.msra.mxu0 %v1564_v1  ;;  %1838 = vmatpush1.bf16.msra.mxu1 %v1566_v2  ;;  %v1508_v11 = vmax.f32 %v1318_v5, 0.0  ;;  %v1510_v12 = vmax.f32 %v1431_v6, 0.0 }
 0x3ff   : > { %v1322_v9 = vpop.f32.mrb[70].mxu0  ;;  %v1435_v10 = vpop.f32.mrb[70].mxu1  ;;  %v1509_v18 = vmax.f32 %v1320_v7, 0.0  ;;  %v1511_v19 = vmax.f32 %v1433_v8, 0.0 }
 0x400   : > { %v1512_v13 = vmax.f32 %v1322_v9, 0.0  ;;  %v1514_v14 = vmax.f32 %v1435_v10, 0.0  ;;  %v1324_v15 = vpop.f32.mrb[71].mxu0  ;;  %v1437_v16 = vpop.f32.mrb[71].mxu1 }
 0x401   : > { %v1513_v20 = vmax.f32 %v1324_v15, 0.0  ;;  %v1515_v21 = vmax.f32 %v1437_v16, 0.0  ;;  %v3371_v6 = vpop.trf.xlu1 }
 0x402   : > { %v1568_v22 = vpack.c.bf16 %v1512_v13, %v1508_v11  ;;  %v1570_v23 = vpack.c.bf16 %v1514_v14, %v1510_v12 }
 0x403   : > { %v1569_v24 = vpack.c.bf16 %v1513_v20, %v1509_v18  ;;  %v1571_v25 = vpack.c.bf16 %v1515_v21, %v1511_v19 }
 0x405   : > { %v1328_v27 = vpop.f32.mrb[72].mxu0  ;;  %v1441_v28 = vpop.f32.mrb[72].mxu1  ;;  %1726 = vmatprep.subr.bf16.mxu0 %v1569_v24  ;;  %1839 = vmatprep.subr.bf16.mxu1 %v1571_v25 }
 0x406   : > { %v1330_v31 = vpop.f32.mrb[73].mxu0  ;;  %v1443_v32 = vpop.f32.mrb[73].mxu1  ;;  %1727 = vmatpush1.bf16.msra.mxu0 %v1568_v22  ;;  %1840 = vmatpush1.bf16.msra.mxu1 %v1570_v23  ;;  %v1516_v35 = vmax.f32 %v1328_v27, 0.0  ;;  %v1518_v36 = vmax.f32 %v1441_v28, 0.0 }
 0x407   : > { %v1332_v33 = vpop.f32.mrb[74].mxu0  ;;  %v1445_v34 = vpop.f32.mrb[74].mxu1  ;;  %v1517_v41 = vmax.f32 %v1330_v31, 0.0  ;;  %v1519_v42 = vmax.f32 %v1443_v32, 0.0 }
 0x408   : > { %v1520_v37 = vmax.f32 %v1332_v33, 0.0  ;;  %v1522_v38 = vmax.f32 %v1445_v34, 0.0  ;;  %v1334_v39 = vpop.f32.mrb[75].mxu0  ;;  %v1447_v40 = vpop.f32.mrb[75].mxu1 }
 0x409   : > { %v1521_v43 = vmax.f32 %v1334_v39, 0.0  ;;  %v1523_v44 = vmax.f32 %v1447_v40, 0.0  ;;  %v3373_v31 = vpop.trf.xlu1 }
 0x40a   : > { %v1572_v45 = vpack.c.bf16 %v1520_v37, %v1516_v35  ;;  %v1574_v46 = vpack.c.bf16 %v1522_v38, %v1518_v36 }
 0x40b   : > { %v1573_v47 = vpack.c.bf16 %v1521_v43, %v1517_v41  ;;  %v1575_v48 = vpack.c.bf16 %v1523_v44, %v1519_v42 }
 0x40d   : > { %v1338_v50 = vpop.f32.mrb[76].mxu0  ;;  %v1451_v51 = vpop.f32.mrb[76].mxu1  ;;  %1728 = vmatprep.subr.bf16.mxu0 %v1573_v47  ;;  %1841 = vmatprep.subr.bf16.mxu1 %v1575_v48 }
 0x40e   : > { %v1340_v52 = vpop.f32.mrb[77].mxu0  ;;  %v1453_v53 = vpop.f32.mrb[77].mxu1  ;;  %1729 = vmatpush1.bf16.msra.mxu0 %v1572_v45  ;;  %1842 = vmatpush1.bf16.msra.mxu1 %v1574_v46  ;;  %v1524_v56 = vmax.f32 %v1338_v50, 0.0  ;;  %v1526_v57 = vmax.f32 %v1451_v51, 0.0 }
 0x40f   : > { %v1342_v54 = vpop.f32.mrb[78].mxu0  ;;  %v1455_v55 = vpop.f32.mrb[78].mxu1  ;;  %v1525_v62 = vmax.f32 %v1340_v52, 0.0  ;;  %v1527_v63 = vmax.f32 %v1453_v53, 0.0 }
 0x410   : > { %v1528_v58 = vmax.f32 %v1342_v54, 0.0  ;;  %v1530_v59 = vmax.f32 %v1455_v55, 0.0  ;;  %v1344_v60 = vpop.f32.mrb[79].mxu0  ;;  %v1457_v61 = vpop.f32.mrb[79].mxu1 }
 0x411   : > { %v1529_v0 = vmax.f32 %v1344_v60, 0.0  ;;  %v1531_v1 = vmax.f32 %v1457_v61, 0.0  ;;  %v3375_v53 = vpop.trf.xlu1 }
 0x412   : > { %v1576_v2 = vpack.c.bf16 %v1528_v58, %v1524_v56  ;;  %v1578_v3 = vpack.c.bf16 %v1530_v59, %v1526_v57 }
 0x413   : > { %v1577_v4 = vpack.c.bf16 %v1529_v0, %v1525_v62  ;;  %v1579_v5 = vpack.c.bf16 %v1531_v1, %v1527_v63 }
 0x415   : > { %v1348_v7 = vpop.f32.mrb[80].mxu0  ;;  %v1461_v8 = vpop.f32.mrb[80].mxu1  ;;  %1730 = vmatprep.subr.bf16.mxu0 %v1577_v4  ;;  %1843 = vmatprep.subr.bf16.mxu1 %v1579_v5 }
 0x416   : > { %v1350_v9 = vpop.f32.mrb[81].mxu0  ;;  %v1463_v10 = vpop.f32.mrb[81].mxu1  ;;  %1731 = vmatpush1.bf16.msra.mxu0 %v1576_v2  ;;  %1844 = vmatpush1.bf16.msra.mxu1 %v1578_v3  ;;  %v1532_v13 = vmax.f32 %v1348_v7, 0.0  ;;  %v1534_v14 = vmax.f32 %v1461_v8, 0.0 }
 0x417   : > { %v1352_v11 = vpop.f32.mrb[82].mxu0  ;;  %v1465_v12 = vpop.f32.mrb[82].mxu1  ;;  %v1533_v20 = vmax.f32 %v1350_v9, 0.0  ;;  %v1535_v21 = vmax.f32 %v1463_v10, 0.0 }
 0x418   : > { %v1536_v15 = vmax.f32 %v1352_v11, 0.0  ;;  %v1538_v16 = vmax.f32 %v1465_v12, 0.0  ;;  %v1354_v18 = vpop.f32.mrb[83].mxu0  ;;  %v1467_v19 = vpop.f32.mrb[83].mxu1 }
 0x419   : > { %v1537_v22 = vmax.f32 %v1354_v18, 0.0  ;;  %v1539_v23 = vmax.f32 %v1467_v19, 0.0  ;;  %v3377_v11 = vpop.trf.xlu1 }
 0x41a   : > { %v1580_v24 = vpack.c.bf16 %v1536_v15, %v1532_v13  ;;  %v1582_v25 = vpack.c.bf16 %v1538_v16, %v1534_v14 }
 0x41b   : > { %v1581_v27 = vpack.c.bf16 %v1537_v22, %v1533_v20  ;;  %v1583_v28 = vpack.c.bf16 %v1539_v23, %v1535_v21 }
 0x41d   : > { %v1358_v32 = vpop.f32.mrb[84].mxu0  ;;  %v1471_v33 = vpop.f32.mrb[84].mxu1  ;;  %1732 = vmatprep.subr.bf16.mxu0 %v1581_v27  ;;  %1845 = vmatprep.subr.bf16.mxu1 %v1583_v28 }
 0x41e   : > { %v1360_v34 = vpop.f32.mrb[85].mxu0  ;;  %v1473_v35 = vpop.f32.mrb[85].mxu1  ;;  %1733 = vmatpush1.bf16.msra.mxu0 %v1580_v24  ;;  %1846 = vmatpush1.bf16.msra.mxu1 %v1582_v25  ;;  %v1540_v38 = vmax.f32 %v1358_v32, 0.0  ;;  %v1542_v39 = vmax.f32 %v1471_v33, 0.0 }
 0x41f   : > { %v1362_v36 = vpop.f32.mrb[86].mxu0  ;;  %v1475_v37 = vpop.f32.mrb[86].mxu1  ;;  %v1541_v44 = vmax.f32 %v1360_v34, 0.0  ;;  %v1543_v45 = vmax.f32 %v1473_v35, 0.0 }
 0x420   : > { %v1544_v40 = vmax.f32 %v1362_v36, 0.0  ;;  %v1546_v41 = vmax.f32 %v1475_v37, 0.0  ;;  %v1364_v42 = vpop.f32.mrb[87].mxu0  ;;  %v1477_v43 = vpop.f32.mrb[87].mxu1 }
 0x421   : > { %v1545_v46 = vmax.f32 %v1364_v42, 0.0  ;;  %v1547_v47 = vmax.f32 %v1477_v43, 0.0  ;;  %v1699_v37 = vpop.trf.xlu1 }
 0x422   : > { %v1584_v48 = vpack.c.bf16 %v1544_v40, %v1540_v38  ;;  %v1586_v50 = vpack.c.bf16 %v1546_v41, %v1542_v39 }
 0x423   : > { %v1585_v51 = vpack.c.bf16 %v1545_v46, %v1541_v44  ;;  %v1587_v52 = vpack.c.bf16 %v1547_v47, %v1543_v45 }
 0x425   : > { %v1368_v54 = vpop.f32.mrb[88].mxu0  ;;  %v1481_v55 = vpop.f32.mrb[88].mxu1  ;;  %1734 = vmatprep.subr.bf16.mxu0 %v1585_v51  ;;  %1847 = vmatprep.subr.bf16.mxu1 %v1587_v52 }
 0x426   : > { %v1370_v56 = vpop.f32.mrb[89].mxu0  ;;  %v1483_v57 = vpop.f32.mrb[89].mxu1  ;;  %1735 = vmatpush1.bf16.msra.mxu0 %v1584_v48  ;;  %1848 = vmatpush1.bf16.msra.mxu1 %v1586_v50  ;;  %v1548_v60 = vmax.f32 %v1368_v54, 0.0  ;;  %v1550_v61 = vmax.f32 %v1481_v55, 0.0 }
 0x427   : > { %v1372_v58 = vpop.f32.mrb[90].mxu0  ;;  %v1485_v59 = vpop.f32.mrb[90].mxu1  ;;  %v1549_v2 = vmax.f32 %v1370_v56, 0.0  ;;  %v1551_v3 = vmax.f32 %v1483_v57, 0.0 }
 0x428   : > { %v1552_v62 = vmax.f32 %v1372_v58, 0.0  ;;  %v1554_v63 = vmax.f32 %v1485_v59, 0.0  ;;  %v1374_v0 = vpop.f32.mrb[91].mxu0  ;;  %v1487_v1 = vpop.f32.mrb[91].mxu1 }
 0x429   : > { %v1553_v4 = vmax.f32 %v1374_v0, 0.0  ;;  %v1555_v5 = vmax.f32 %v1487_v1, 0.0  ;;  %v1676_v38 = vpop.trf.xlu1 }
 0x42a   : > { %v1588_v7 = vpack.c.bf16 %v1552_v62, %v1548_v60  ;;  %v1590_v8 = vpack.c.bf16 %v1554_v63, %v1550_v61 }
 0x42b   : > { %v1589_v9 = vpack.c.bf16 %v1553_v4, %v1549_v2  ;;  %v1591_v10 = vpack.c.bf16 %v1555_v5, %v1551_v3 }
 0x42d   : > { %v1378_v12 = vpop.f32.mrb[92].mxu0  ;;  %v1491_v13 = vpop.f32.mrb[92].mxu1  ;;  %1736 = vmatprep.subr.bf16.mxu0 %v1589_v9  ;;  %1849 = vmatprep.subr.bf16.mxu1 %v1591_v10 }
 0x42e   : > { %v1380_v14 = vpop.f32.mrb[93].mxu0  ;;  %v1493_v15 = vpop.f32.mrb[93].mxu1  ;;  %1737 = vmatpush1.bf16.msra.mxu0 %v1588_v7  ;;  %1850 = vmatpush1.bf16.msra.mxu1 %v1590_v8  ;;  %v1556_v19 = vmax.f32 %v1378_v12, 0.0  ;;  %v1558_v20 = vmax.f32 %v1491_v13, 0.0 }
 0x42f   : > { %v1382_v16 = vpop.f32.mrb[94].mxu0  ;;  %v1495_v18 = vpop.f32.mrb[94].mxu1  ;;  %v1557_v25 = vmax.f32 %v1380_v14, 0.0  ;;  %v1559_v27 = vmax.f32 %v1493_v15, 0.0 }
 0x430   : > { %v1560_v21 = vmax.f32 %v1382_v16, 0.0  ;;  %v1562_v22 = vmax.f32 %v1495_v18, 0.0  ;;  %v1384_v23 = vpop.f32.mrb[95].mxu0  ;;  %v1497_v24 = vpop.f32.mrb[95].mxu1 }
 0x431   : > { %v1561_v28 = vmax.f32 %v1384_v23, 0.0  ;;  %v1563_v32 = vmax.f32 %v1497_v24, 0.0  ;;  %v1677_v39 = vpop.trf.xlu1 }
 0x432   : > { %v1592_v33 = vpack.c.bf16 %v1560_v21, %v1556_v19  ;;  %v1594_v34 = vpack.c.bf16 %v1562_v22, %v1558_v20 }
 0x433   : > { %v1593_v35 = vpack.c.bf16 %v1561_v28, %v1557_v25  ;;  %v1595_v36 = vpack.c.bf16 %v1563_v32, %v1559_v27 }
 0x435   : > { %1738 = vmatprep.subr.bf16.mxu0 %v1593_v35  ;;  %1851 = vmatprep.subr.bf16.mxu1 %v1595_v36  ;;  %v1678_v30 = vpop.trf.xlu1 }
 0x436   : > { %1739 = vmatpush1.bf16.msra.mxu0 %v1592_v33  ;;  %1852 = vmatpush1.bf16.msra.mxu1 %v1594_v34 }
 0x437   : > { %2531 = vmatprep.subr.msk.bf16.mxu0 %vm3298_vm4, %v3295_v29  ;;  %2545 = vmatprep.subr.msk.bf16.mxu1 %vm3298_vm4, %v3295_v29 }
 0x43a   : > { %2534 = vmatpush1.bf16.msk.msra.mxu0 %vm3298_vm4, %v3295_v29  ;;  %2548 = vmatpush1.bf16.msk.msra.mxu1 %vm3298_vm4, %v3295_v29  ;;  %v1679_v29 = vpop.trf.xlu1 }
 0x43d   : > { %1757 = vmatmul.mubr.bf16.vlgmr.msra.gmra.mrb[96].mxu0 %v1676_v38  ;;  %1870 = vmatmul.mubr.bf16.vlgmr.msra.gmra.mrb[96].mxu1 %v1676_v38 }
 0x43e   : > { %2536 = vmatprep.mubr.msk.bf16.mxu0 %vm349_vm1, %v3367_v26  ;;  %2550 = vmatprep.mubr.msk.bf16.mxu1 %vm349_vm1, %v3367_v26  ;;  %v1680_v26 = vpop.trf.xlu1 }
 0x445   : > { %1767 = vmatmul.mubr.bf16.gmra.mrb[100].mxu0 %v1677_v39  ;;  %1880 = vmatmul.mubr.bf16.gmra.mrb[100].mxu1 %v1677_v39 }
 0x446   : > { %2537 = vmatprep.mubr.msk.bf16.mxu0 %vm349_vm1, %v3369_v49  ;;  %2551 = vmatprep.mubr.msk.bf16.mxu1 %vm349_vm1, %v3369_v49  ;;  %v1681_v49 = vpop.trf.xlu1 }
 0x44d   : > { %1777 = vmatmul.mubr.bf16.gmra.mrb[104].mxu0 %v1678_v30  ;;  %1890 = vmatmul.mubr.bf16.gmra.mrb[104].mxu1 %v1678_v30 }
 0x44e   : > { %2538 = vmatprep.mubr.msk.bf16.mxu0 %vm349_vm1, %v3371_v6  ;;  %2552 = vmatprep.mubr.msk.bf16.mxu1 %vm349_vm1, %v3371_v6  ;;  %v1682_v6 = vpop.trf.xlu1 }
 0x455   : > { %1787 = vmatmul.mubr.bf16.gmra.mrb[108].mxu0 %v1679_v29  ;;  %1900 = vmatmul.mubr.bf16.gmra.mrb[108].mxu1 %v1679_v29 }
 0x456   : > { %2539 = vmatprep.mubr.msk.bf16.mxu0 %vm349_vm1, %v3373_v31  ;;  %2553 = vmatprep.mubr.msk.bf16.mxu1 %vm349_vm1, %v3373_v31  ;;  %v1683_v31 = vpop.trf.xlu1 }
 0x45d   : > { %1797 = vmatmul.mubr.bf16.gmra.mrb[112].mxu0 %v1680_v26  ;;  %1910 = vmatmul.mubr.bf16.gmra.mrb[112].mxu1 %v1680_v26 }
 0x45e   : > { %2540 = vmatprep.mubr.msk.bf16.mxu0 %vm349_vm1, %v3375_v53  ;;  %2554 = vmatprep.mubr.msk.bf16.mxu1 %vm349_vm1, %v3375_v53 }
 0x465   : > { %1807 = vmatmul.mubr.bf16.gmra.mrb[116].mxu0 %v1681_v49  ;;  %1920 = vmatmul.mubr.bf16.gmra.mrb[116].mxu1 %v1681_v49 }
 0x466   : > { %2541 = vmatprep.mubr.msk.bf16.mxu0 %vm349_vm1, %v3377_v11  ;;  %2555 = vmatprep.mubr.msk.bf16.mxu1 %vm349_vm1, %v3377_v11 }
 0x46d   : > { %1817 = vmatmul.mubr.bf16.gmra.mrb[120].mxu0 %v1682_v6  ;;  %1930 = vmatmul.mubr.bf16.gmra.mrb[120].mxu1 %v1682_v6 }
 0x46e   : > { %2542 = vmatprep.mubr.msk.bf16.mxu0 %vm349_vm1, %v1699_v37  ;;  %2556 = vmatprep.mubr.msk.bf16.mxu1 %vm349_vm1, %v1699_v37 }
 0x475   : > { %1827 = vmatmul.mubr.bf16.gmra.mrb[124].mxu0 %v1683_v31  ;;  %1940 = vmatmul.mubr.bf16.gmra.mrb[124].mxu1 %v1683_v31 }
 0x476   : > { %2094 = vmatprep.mubr.bf16.mxu0 %v2957_v17  ;;  %2147 = vmatprep.mubr.bf16.mxu1 %v2957_v17 }
 0x510   : > { %v1758_v40 = vpop.f32.mrb[96].mxu0  ;;  %v1871_v41 = vpop.f32.mrb[96].mxu1 }
 0x511   : > { %v1760_v42 = vpop.f32.mrb[97].mxu0  ;;  %v1873_v43 = vpop.f32.mrb[97].mxu1  ;;  %v1950_v46 = vmax.f32 %v1758_v40, 0.0  ;;  %v1952_v47 = vmax.f32 %v1871_v41, 0.0 }
 0x512   : > { %v1762_v44 = vpop.f32.mrb[98].mxu0  ;;  %v1875_v45 = vpop.f32.mrb[98].mxu1  ;;  %v1951_v53 = vmax.f32 %v1760_v42, 0.0  ;;  %v1953_v54 = vmax.f32 %v1873_v43, 0.0 }
 0x513   : > { %v1954_v48 = vmax.f32 %v1762_v44, 0.0  ;;  %v1956_v50 = vmax.f32 %v1875_v45, 0.0  ;;  %v1764_v51 = vpop.f32.mrb[99].mxu0  ;;  %v1877_v52 = vpop.f32.mrb[99].mxu1 }
 0x514   : > { %v1955_v55 = vmax.f32 %v1764_v51, 0.0  ;;  %v1957_v56 = vmax.f32 %v1877_v52, 0.0 }
 0x515   : > { %v2014_v57 = vpack.c.bf16 %v1954_v48, %v1950_v46  ;;  %v2016_v58 = vpack.c.bf16 %v1956_v50, %v1952_v47 }
 0x516   : > { %v2015_v59 = vpack.c.bf16 %v1955_v55, %v1951_v53  ;;  %v2017_v60 = vpack.c.bf16 %v1957_v56, %v1953_v54 }
 0x518   : > { %v1768_v61 = vpop.f32.mrb[100].mxu0  ;;  %v1881_v62 = vpop.f32.mrb[100].mxu1  ;;  %2062 = vmatprep.subr.bf16.mxu0 %v2015_v59  ;;  %2115 = vmatprep.subr.bf16.mxu1 %v2017_v60 }
 0x519   : > { %v1770_v63 = vpop.f32.mrb[101].mxu0  ;;  %v1883_v0 = vpop.f32.mrb[101].mxu1  ;;  %2063 = vmatpush1.bf16.msra.mxu0 %v2014_v57  ;;  %2116 = vmatpush1.bf16.msra.mxu1 %v2016_v58  ;;  %v1958_v3 = vmax.f32 %v1768_v61, 0.0  ;;  %v1960_v4 = vmax.f32 %v1881_v62, 0.0 }
 0x51a   : > { %v1772_v1 = vpop.f32.mrb[102].mxu0  ;;  %v1885_v2 = vpop.f32.mrb[102].mxu1  ;;  %v1959_v10 = vmax.f32 %v1770_v63, 0.0  ;;  %v1961_v11 = vmax.f32 %v1883_v0, 0.0 }
 0x51b   : > { %v1962_v5 = vmax.f32 %v1772_v1, 0.0  ;;  %v1964_v7 = vmax.f32 %v1885_v2, 0.0  ;;  %v1774_v8 = vpop.f32.mrb[103].mxu0  ;;  %v1887_v9 = vpop.f32.mrb[103].mxu1 }
 0x51c   : > { %v1963_v12 = vmax.f32 %v1774_v8, 0.0  ;;  %v1965_v13 = vmax.f32 %v1887_v9, 0.0 }
 0x51d   : > { %v2018_v14 = vpack.c.bf16 %v1962_v5, %v1958_v3  ;;  %v2020_v15 = vpack.c.bf16 %v1964_v7, %v1960_v4 }
 0x51e   : > { %v2019_v16 = vpack.c.bf16 %v1963_v12, %v1959_v10  ;;  %v2021_v18 = vpack.c.bf16 %v1965_v13, %v1961_v11 }
 0x520   : > { %v1778_v19 = vpop.f32.mrb[104].mxu0  ;;  %v1891_v20 = vpop.f32.mrb[104].mxu1  ;;  %2064 = vmatprep.subr.bf16.mxu0 %v2019_v16  ;;  %2117 = vmatprep.subr.bf16.mxu1 %v2021_v18 }
 0x521   : > { %v1780_v21 = vpop.f32.mrb[105].mxu0  ;;  %v1893_v22 = vpop.f32.mrb[105].mxu1  ;;  %2065 = vmatpush1.bf16.msra.mxu0 %v2018_v14  ;;  %2118 = vmatpush1.bf16.msra.mxu1 %v2020_v15  ;;  %v1966_v25 = vmax.f32 %v1778_v19, 0.0  ;;  %v1968_v27 = vmax.f32 %v1891_v20, 0.0 }
 0x522   : > { %v1782_v23 = vpop.f32.mrb[106].mxu0  ;;  %v1895_v24 = vpop.f32.mrb[106].mxu1  ;;  %v1967_v35 = vmax.f32 %v1780_v21, 0.0  ;;  %v1969_v36 = vmax.f32 %v1893_v22, 0.0 }
 0x523   : > { %v1970_v28 = vmax.f32 %v1782_v23, 0.0  ;;  %v1972_v32 = vmax.f32 %v1895_v24, 0.0  ;;  %v1784_v33 = vpop.f32.mrb[107].mxu0  ;;  %v1897_v34 = vpop.f32.mrb[107].mxu1 }
 0x524   : > { %v1971_v37 = vmax.f32 %v1784_v33, 0.0  ;;  %v1973_v38 = vmax.f32 %v1897_v34, 0.0 }
 0x525   : > { %v2022_v39 = vpack.c.bf16 %v1970_v28, %v1966_v25  ;;  %v2024_v30 = vpack.c.bf16 %v1972_v32, %v1968_v27 }
 0x526   : > { %v2023_v29 = vpack.c.bf16 %v1971_v37, %v1967_v35  ;;  %v2025_v26 = vpack.c.bf16 %v1973_v38, %v1969_v36 }
 0x528   : > { %v1788_v49 = vpop.f32.mrb[108].mxu0  ;;  %v1901_v6 = vpop.f32.mrb[108].mxu1  ;;  %2066 = vmatprep.subr.bf16.mxu0 %v2023_v29  ;;  %2119 = vmatprep.subr.bf16.mxu1 %v2025_v26 }
 0x529   : > { %v1790_v31 = vpop.f32.mrb[109].mxu0  ;;  %v1903_v40 = vpop.f32.mrb[109].mxu1  ;;  %2067 = vmatpush1.bf16.msra.mxu0 %v2022_v39  ;;  %2120 = vmatpush1.bf16.msra.mxu1 %v2024_v30  ;;  %v1974_v43 = vmax.f32 %v1788_v49, 0.0  ;;  %v1976_v44 = vmax.f32 %v1901_v6, 0.0 }
 0x52a   : > { %v1792_v41 = vpop.f32.mrb[110].mxu0  ;;  %v1905_v42 = vpop.f32.mrb[110].mxu1  ;;  %v1975_v50 = vmax.f32 %v1790_v31, 0.0  ;;  %v1977_v51 = vmax.f32 %v1903_v40, 0.0 }
 0x52b   : > { %v1978_v45 = vmax.f32 %v1792_v41, 0.0  ;;  %v1980_v46 = vmax.f32 %v1905_v42, 0.0  ;;  %v1794_v47 = vpop.f32.mrb[111].mxu0  ;;  %v1907_v48 = vpop.f32.mrb[111].mxu1 }
 0x52c   : > { %v1979_v52 = vmax.f32 %v1794_v47, 0.0  ;;  %v1981_v53 = vmax.f32 %v1907_v48, 0.0 }
 0x52d   : > { %v2026_v54 = vpack.c.bf16 %v1978_v45, %v1974_v43  ;;  %v2028_v55 = vpack.c.bf16 %v1980_v46, %v1976_v44 }
 0x52e   : > { %v2027_v56 = vpack.c.bf16 %v1979_v52, %v1975_v50  ;;  %v2029_v57 = vpack.c.bf16 %v1981_v53, %v1977_v51 }
 0x530   : > { %v1798_v58 = vpop.f32.mrb[112].mxu0  ;;  %v1911_v59 = vpop.f32.mrb[112].mxu1  ;;  %2068 = vmatprep.subr.bf16.mxu0 %v2027_v56  ;;  %2121 = vmatprep.subr.bf16.mxu1 %v2029_v57 }
 0x531   : > { %v1800_v60 = vpop.f32.mrb[113].mxu0  ;;  %v1913_v61 = vpop.f32.mrb[113].mxu1  ;;  %2069 = vmatpush1.bf16.msra.mxu0 %v2026_v54  ;;  %2122 = vmatpush1.bf16.msra.mxu1 %v2028_v55  ;;  %v1982_v0 = vmax.f32 %v1798_v58, 0.0  ;;  %v1984_v1 = vmax.f32 %v1911_v59, 0.0 }
 0x532   : > { %v1802_v62 = vpop.f32.mrb[114].mxu0  ;;  %v1915_v63 = vpop.f32.mrb[114].mxu1  ;;  %v1983_v7 = vmax.f32 %v1800_v60, 0.0  ;;  %v1985_v8 = vmax.f32 %v1913_v61, 0.0 }
 0x533   : > { %v1986_v2 = vmax.f32 %v1802_v62, 0.0  ;;  %v1988_v3 = vmax.f32 %v1915_v63, 0.0  ;;  %v1804_v4 = vpop.f32.mrb[115].mxu0  ;;  %v1917_v5 = vpop.f32.mrb[115].mxu1 }
 0x534   : > { %v1987_v9 = vmax.f32 %v1804_v4, 0.0  ;;  %v1989_v10 = vmax.f32 %v1917_v5, 0.0 }
 0x535   : > { %v2030_v11 = vpack.c.bf16 %v1986_v2, %v1982_v0  ;;  %v2032_v12 = vpack.c.bf16 %v1988_v3, %v1984_v1 }
 0x536   : > { %v2031_v13 = vpack.c.bf16 %v1987_v9, %v1983_v7  ;;  %v2033_v14 = vpack.c.bf16 %v1989_v10, %v1985_v8 }
 0x538   : > { %v1808_v15 = vpop.f32.mrb[116].mxu0  ;;  %v1921_v16 = vpop.f32.mrb[116].mxu1  ;;  %2070 = vmatprep.subr.bf16.mxu0 %v2031_v13  ;;  %2123 = vmatprep.subr.bf16.mxu1 %v2033_v14  ;;  %v2728_v13 = vld [vmem:[%s3222_s8 + $0xe8] sm:$0xff]   ;;  %v2168_v14 = vld [vmem:[#allocation2] sm:$0xff] }
 0x539   : > { %v1810_v18 = vpop.f32.mrb[117].mxu0  ;;  %v1923_v19 = vpop.f32.mrb[117].mxu1  ;;  %2071 = vmatpush1.bf16.msra.mxu0 %v2030_v11  ;;  %2124 = vmatpush1.bf16.msra.mxu1 %v2032_v12  ;;  %v1990_v22 = vmax.f32 %v1808_v15, 0.0  ;;  %v1992_v23 = vmax.f32 %v1921_v16, 0.0  ;;  %v2727_v12 = vld [vmem:[%s3222_s8 + $0xe0] sm:$0xff]   ;;  %v2169_v16 = vld [vmem:[#allocation2 + $0x8] sm:$0xff] }
 0x53a   : > { %v1812_v20 = vpop.f32.mrb[118].mxu0  ;;  %v1925_v21 = vpop.f32.mrb[118].mxu1  ;;  %v1991_v32 = vmax.f32 %v1810_v18, 0.0  ;;  %v1993_v33 = vmax.f32 %v1923_v19, 0.0  ;;  %v2170_v15 = vld [vmem:[#allocation2 + $0x10] sm:$0xff]  ;;  %v2171_v18 = vld [vmem:[#allocation2 + $0x18] sm:$0xff] }
 0x53b   : > { %v1994_v24 = vmax.f32 %v1812_v20, 0.0  ;;  %v1996_v25 = vmax.f32 %v1925_v21, 0.0  ;;  %v1814_v27 = vpop.f32.mrb[119].mxu0  ;;  %v1927_v28 = vpop.f32.mrb[119].mxu1  ;;  %v2172_v21 = vld [vmem:[#allocation2 + $0x20] sm:$0xff] }
 0x53c   : > { %v1995_v34 = vmax.f32 %v1814_v27, 0.0  ;;  %v1997_v35 = vmax.f32 %v1927_v28, 0.0  ;;  %v2173_v28 = vld [vmem:[#allocation2 + $0x28] sm:$0xff] }
 0x53d   : > { %v2034_v36 = vpack.c.bf16 %v1994_v24, %v1990_v22  ;;  %v2036_v37 = vpack.c.bf16 %v1996_v25, %v1992_v23  ;;  %v2174_v22 = vld [vmem:[#allocation2 + $0x30] sm:$0xff] }
 0x53e   : > { %v2035_v38 = vpack.c.bf16 %v1995_v34, %v1991_v32  ;;  %v2037_v39 = vpack.c.bf16 %v1997_v35, %v1993_v33  ;;  %v2175_v32 = vld [vmem:[#allocation2 + $0x38] sm:$0xff] }
 0x540   : > { %v1818_v30 = vpop.f32.mrb[120].mxu0  ;;  %v1931_v29 = vpop.f32.mrb[120].mxu1  ;;  %2072 = vmatprep.subr.bf16.mxu0 %v2035_v38  ;;  %2125 = vmatprep.subr.bf16.mxu1 %v2037_v39 }
 0x541   : > { %v1820_v26 = vpop.f32.mrb[121].mxu0  ;;  %v1933_v49 = vpop.f32.mrb[121].mxu1  ;;  %2073 = vmatpush1.bf16.msra.mxu0 %v2034_v36  ;;  %2126 = vmatpush1.bf16.msra.mxu1 %v2036_v37  ;;  %v1998_v40 = vmax.f32 %v1818_v30, 0.0  ;;  %v2000_v41 = vmax.f32 %v1931_v29, 0.0 }
 0x542   : > { %v1822_v6 = vpop.f32.mrb[122].mxu0  ;;  %v1935_v31 = vpop.f32.mrb[122].mxu1  ;;  %v1999_v46 = vmax.f32 %v1820_v26, 0.0  ;;  %v2001_v47 = vmax.f32 %v1933_v49, 0.0  ;;  %v2176_v26 = vld [vmem:[#allocation2 + $0x40] sm:$0xff]  ;;  %v2178_v49 = vld [vmem:[#allocation2 + $0x50] sm:$0xff] }
 0x543   : > { %v2002_v42 = vmax.f32 %v1822_v6, 0.0  ;;  %v2004_v43 = vmax.f32 %v1935_v31, 0.0  ;;  %v1824_v44 = vpop.f32.mrb[123].mxu0  ;;  %v1937_v45 = vpop.f32.mrb[123].mxu1  ;;  %v2177_v6 = vld [vmem:[#allocation2 + $0x48] sm:$0xff]  ;;  %v2179_v31 = vld [vmem:[#allocation2 + $0x58] sm:$0xff] }
 0x544   : > { %v2003_v48 = vmax.f32 %v1824_v44, 0.0  ;;  %v2005_v50 = vmax.f32 %v1937_v45, 0.0 }
 0x545   : > { %v2038_v51 = vpack.c.bf16 %v2002_v42, %v1998_v40  ;;  %v2040_v52 = vpack.c.bf16 %v2004_v43, %v2000_v41  ;;  %v2180_v42 = vld [vmem:[#allocation2 + $0x60] sm:$0xff]  ;;  %v2182_v43 = vld [vmem:[#allocation2 + $0x70] sm:$0xff] }
 0x546   : > { %v2039_v53 = vpack.c.bf16 %v2003_v48, %v1999_v46  ;;  %v2041_v54 = vpack.c.bf16 %v2005_v50, %v2001_v47  ;;  %v2181_v48 = vld [vmem:[#allocation2 + $0x68] sm:$0xff]  ;;  %v2183_v50 = vld [vmem:[#allocation2 + $0x78] sm:$0xff] }
 0x548   : > { %v1828_v55 = vpop.f32.mrb[124].mxu0  ;;  %v1941_v56 = vpop.f32.mrb[124].mxu1  ;;  %2074 = vmatprep.subr.bf16.mxu0 %v2039_v53  ;;  %2127 = vmatprep.subr.bf16.mxu1 %v2041_v54 }
 0x549   : > { %v1830_v57 = vpop.f32.mrb[125].mxu0  ;;  %v1943_v58 = vpop.f32.mrb[125].mxu1  ;;  %2075 = vmatpush1.bf16.msra.mxu0 %v2038_v51  ;;  %2128 = vmatpush1.bf16.msra.mxu1 %v2040_v52  ;;  %v2006_v61 = vmax.f32 %v1828_v55, 0.0  ;;  %v2008_v62 = vmax.f32 %v1941_v56, 0.0 }
 0x54a   : > { %v1832_v59 = vpop.f32.mrb[126].mxu0  ;;  %v1945_v60 = vpop.f32.mrb[126].mxu1  ;;  %v2007_v3 = vmax.f32 %v1830_v57, 0.0  ;;  %v2009_v4 = vmax.f32 %v1943_v58, 0.0 }
 0x54b   : > { %v2010_v63 = vmax.f32 %v1832_v59, 0.0  ;;  %v2012_v0 = vmax.f32 %v1945_v60, 0.0  ;;  %v1834_v1 = vpop.f32.mrb[127].mxu0  ;;  %v1947_v2 = vpop.f32.mrb[127].mxu1 }
 0x54c   : > { %v2011_v5 = vmax.f32 %v1834_v1, 0.0  ;;  %v2013_v7 = vmax.f32 %v1947_v2, 0.0 }
 0x54d   : > { %v2042_v8 = vpack.c.bf16 %v2010_v63, %v2006_v61  ;;  %v2044_v9 = vpack.c.bf16 %v2012_v0, %v2008_v62 }
 0x54e   : > { %v2043_v10 = vpack.c.bf16 %v2011_v5, %v2007_v3  ;;  %v2045_v11 = vpack.c.bf16 %v2013_v7, %v2009_v4 }
 0x550   : > { %2076 = vmatprep.subr.bf16.mxu0 %v2043_v10  ;;  %2129 = vmatprep.subr.bf16.mxu1 %v2045_v11 }
 0x551   : > { %2077 = vmatpush1.bf16.msra.mxu0 %v2042_v8  ;;  %2130 = vmatpush1.bf16.msra.mxu1 %v2044_v9 }
 0x554   : > { %2095 = vmatmul.mubr.bf16.vlgmr.msra.gmra.mrb[128].mxu0 %v2727_v12  ;;  %2148 = vmatmul.mubr.bf16.vlgmr.msra.gmra.mrb[128].mxu1 %v2727_v12 }
 0x555   : > { %2104 = vmatprep.mubr.bf16.mxu0 %v2957_v17  ;;  %2157 = vmatprep.mubr.bf16.mxu1 %v2957_v17 }
 0x55c   : > { %2105 = vmatmul.mubr.bf16.gmra.mrb[132].mxu0 %v2728_v13  ;;  %2158 = vmatmul.mubr.bf16.gmra.mrb[132].mxu1 %v2728_v13 }
 0x627   : > { %v2096_v19 = vpop.f32.mrb[128].mxu0  ;;  %v2149_v20 = vpop.f32.mrb[128].mxu1 }
 0x628   : > { %v2184_v23 = vadd.f32 %v2168_v14, %v2096_v19  ;;  %v2186_v24 = vadd.f32 %v2170_v15, %v2149_v20  ;;  %v2098_v25 = vpop.f32.mrb[129].mxu0  ;;  %v2151_v27 = vpop.f32.mrb[129].mxu1 }
 0x629   : > { %v2185_v33 = vadd.f32 %v2169_v16, %v2098_v25  ;;  %v2187_v34 = vadd.f32 %v2171_v18, %v2151_v27  ;;  %v2100_v17 = vpop.f32.mrb[130].mxu0  ;;  %v2153_v35 = vpop.f32.mrb[130].mxu1 }
 0x62a   : > { %2200 = vst [vmem:[#allocation2] sm:$0xff] %v2184_v23  ;;  %2202 = vst [vmem:[#allocation2 + $0x10] sm:$0xff] %v2186_v24  ;;  %v2188_v36 = vadd.f32 %v2172_v21, %v2100_v17  ;;  %v2190_v37 = vadd.f32 %v2174_v22, %v2153_v35  ;;  %v2102_v38 = vpop.f32.mrb[131].mxu0  ;;  %v2155_v39 = vpop.f32.mrb[131].mxu1 }
 0x62b   : > { %2201 = vst [vmem:[#allocation2 + $0x8] sm:$0xff] %v2185_v33  ;;  %2203 = vst [vmem:[#allocation2 + $0x18] sm:$0xff] %v2187_v34  ;;  %v2189_v30 = vadd.f32 %v2173_v28, %v2102_v38  ;;  %v2191_v29 = vadd.f32 %v2175_v32, %v2155_v39 }
 0x62c   : > { %2204 = vst [vmem:[#allocation2 + $0x20] sm:$0xff] %v2188_v36  ;;  %2206 = vst [vmem:[#allocation2 + $0x30] sm:$0xff] %v2190_v37 }
 0x62d   : > { %2205 = vst [vmem:[#allocation2 + $0x28] sm:$0xff] %v2189_v30  ;;  %2207 = vst [vmem:[#allocation2 + $0x38] sm:$0xff] %v2191_v29 }
 0x62f   : > { %v2106_v40 = vpop.f32.mrb[132].mxu0  ;;  %v2159_v41 = vpop.f32.mrb[132].mxu1  ;;  %2219 = sbr.rel (%p2559_p1) target bundleno = 1597 (0x63d), region = 44 }
 0x630   : > { %v2192_v44 = vadd.f32 %v2176_v26, %v2106_v40  ;;  %v2194_v45 = vadd.f32 %v2178_v49, %v2159_v41  ;;  %v2108_v46 = vpop.f32.mrb[133].mxu0  ;;  %v2161_v47 = vpop.f32.mrb[133].mxu1 }
 0x631   : > { %v2193_v51 = vadd.f32 %v2177_v6, %v2108_v46  ;;  %v2195_v52 = vadd.f32 %v2179_v31, %v2161_v47  ;;  %v2110_v53 = vpop.f32.mrb[134].mxu0  ;;  %v2163_v54 = vpop.f32.mrb[134].mxu1  ;;  %v2220_v61 = vld [vmem:[#allocation2] sm:$0xff] (!%p2559_p1)  ;;  %v2222_v63 = vld [vmem:[#allocation2 + $0x10] sm:$0xff] (!%p2559_p1) }
 0x632   : > { %2208 = vst [vmem:[#allocation2 + $0x40] sm:$0xff] %v2192_v44  ;;  %2210 = vst [vmem:[#allocation2 + $0x50] sm:$0xff] %v2194_v45  ;;  %v2196_v55 = vadd.f32 %v2180_v42, %v2110_v53  ;;  %v2198_v56 = vadd.f32 %v2182_v43, %v2163_v54  ;;  %v2112_v57 = vpop.f32.mrb[135].mxu0  ;;  %v2165_v58 = vpop.f32.mrb[135].mxu1  ;;  %v2221_v62 = vld [vmem:[#allocation2 + $0x8] sm:$0xff] (!%p2559_p1)  ;;  %v2223_v0 = vld [vmem:[#allocation2 + $0x18] sm:$0xff] (!%p2559_p1) }
 0x633   : > { %2209 = vst [vmem:[#allocation2 + $0x48] sm:$0xff] %v2193_v51  ;;  %2211 = vst [vmem:[#allocation2 + $0x58] sm:$0xff] %v2195_v52  ;;  %v2197_v59 = vadd.f32 %v2181_v48, %v2112_v57  ;;  %v2199_v60 = vadd.f32 %v2183_v50, %v2165_v58  ;;  %v2224_v1 = vld [vmem:[#allocation2 + $0x20] sm:$0x3] (!%p2559_p1)  ;;  %v2226_v3 = vld [vmem:[#allocation2 + $0x30] sm:$0x3] (!%p2559_p1) }
 0x634   : > { %2212 = vst [vmem:[#allocation2 + $0x60] sm:$0xff] %v2196_v55  ;;  %2214 = vst [vmem:[#allocation2 + $0x70] sm:$0xff] %v2198_v56  ;;  %v2225_v2 = vld [vmem:[#allocation2 + $0x28] sm:$0x3] (!%p2559_p1)  ;;  %v2227_v4 = vld [vmem:[#allocation2 + $0x38] sm:$0x3] (!%p2559_p1) }
 0x635   : > { %2213 = vst [vmem:[#allocation2 + $0x68] sm:$0xff] %v2197_v59  ;;  %2215 = vst [vmem:[#allocation2 + $0x78] sm:$0xff] %v2199_v60 }
 0x636   : > { %2228 = vst [vmem:[%s3229_s26] sm:$0xff] %v2220_v61  ;;  %2229 = vst [vmem:[%s3229_s26 + $0x8] sm:$0xff] %v2221_v62 }
 0x637   : > { %2230 = vst [vmem:[%s3229_s26 + $0x10] sm:$0xff] %v2222_v63  ;;  %2231 = vst [vmem:[%s3229_s26 + $0x18] sm:$0xff] %v2223_v0 }
 0x638   : > { %2232 = vst [vmem:[%s3229_s26 + $0x20] sm:$0x3] %v2224_v1  ;;  %2233 = vst [vmem:[%s3229_s26 + $0x28] sm:$0x3] %v2225_v2 }
 0x639   : > { %v2236_v5 = vld [vmem:[#allocation2 + $0x40] sm:$0x1f]  ;;  %2234 = vst [vmem:[%s3229_s26 + $0x30] sm:$0x3] %v2226_v3  ;;  %2235 = vst [vmem:[%s3229_s26 + $0x38] sm:$0x3] %v2227_v4 }
 0x63a   : > { %2240 = vst [vmem:[%s3231_s25] sm:$0x1f] %v2236_v5  ;;  %v2237_v7 = vld [vmem:[#allocation2 + $0x48] sm:$0x1f]  ;;  %v2238_v8 = vld [vmem:[#allocation2 + $0x50] sm:$0x1f] }
 0x63b   : > { %v2239_v9 = vld [vmem:[#allocation2 + $0x58] sm:$0x1f]  ;;  %2241 = vst [vmem:[%s3231_s25 + $0x8] sm:$0x1f] %v2237_v7  ;;  %2242 = vst [vmem:[%s3231_s25 + $0x10] sm:$0x1f] %v2238_v8 }
 0x63c   : > { %2243 = vst [vmem:[%s3231_s25 + $0x18] sm:$0x1f] %v2239_v9 }
 0x63d PF: > { %s2569_s18 = sshll.u32 %s2935_s19, 9  ;;  %s3571_s2 = sld [smem:[#allocation20_spill]] }
 0x63e   : > { %s2263_s5 = sshll.u32 %s3229_s26, 4  ;;  %s2245_s23 = scalar_lea.sflag [#allocation5], %s3211_s10  ;;  %s3445_s5 = int_to_ptr.vmem [resolvable:$true] %s2263_s5 }
 0x63f   : > { %s2789_s9 = scalar_lea.vmem %s3445_s5, 1024  ;;  %p3572_p5 = scmp.ne.s32.totalorder %s3551_s27, 0 }
 0x640   : > { %p2790_p9 = scmp.ne.s32.totalorder %s3445_s5, %s2789_s9  ;;  %s2961_s4 = smov [#allocation8]  }
 0x641   : > { %s2793_s0 = sshll.u32 %s2961_s4, 4  ;;  %s2794_s0 = int_to_ptr.vmem [resolvable:$false] %s2793_s0 }
 0x642   : > { %p2791_p13 = pnand %p2790_p9, %p3572_p5  ;;  %s2795_s29 = scalar_lea.vmem %s2794_s0, 2048 }
 0x643   : > { %s3442_s21 = scalar_lea.hbm %s3571_s2, %s2569_s18  ;;  %p2796_p12 = scmp.lt.s32.totalorder %s3445_s5, %s2794_s0 }
 0x644   : > { %p2792_p2 = pneg %p2791_p13  ;;  %p2797_p10 = scmp.lt.s32.totalorder %s2795_s29, %s2789_s9 }
 0x646   : > { %p2798_p11 = por %p2797_p10, %p2796_p12 }
 0x648   : > { %p2799_p3 = pnand %p2798_p11, %p2792_p2 }
 0x64a   : > { %2802 = shalt.err (!%p2799_p3)
}
 0x64b   : > { %s2803_s30 = scalar_lea.hbm %s3442_s21, 1024  ;;  %s2807_s26 = scalar_lea.hbm %s3571_s2, 2048 }
 0x64c   : > { %p2804_p4 = scmp.ne.s32.totalorder %s3442_s21, %s2803_s30  ;;  %p2808_p7 = scmp.lt.u32.totalorder %s3442_s21, %s3571_s2 }
 0x64d   : > { %p2809_p0 = scmp.lt.u32.totalorder %s2807_s26, %s2803_s30  ;;  %p2811_p9 = scmp.lt.u32.totalorder %s2803_s30, %s3442_s21 }
 0x64e   : > { %p2805_p8 = pnand %p2804_p4, %p3572_p5 }
 0x64f   : > { %p2810_p1 = por %p2809_p0, %p2808_p7 }
 0x650   : > { %p2806_p6 = pneg %p2805_p8 }
 0x651   : > { %p2812_p13 = por %p2811_p9, %p2810_p1 }
 0x653   : > { %p2813_p2 = pnand %p2812_p13, %p2806_p6 }
 0x655   : > { %2816 = shalt.err (!%p2813_p2)
}
 0x656   : > { %s2962_s9 = smov 512   ;;  %s2963_s4 = smov 1024  }
 0x657   : > { %s2964_s0 = smov 32   ;;  %s3476_s8 = scalar_lea.hbm %s3537_s3, %s2569_s18 }
 0x658   : > { %2578 = dma.vmem_to_hbm [thread:$0]  (%p3572_p5), %s3445_s5, 1024, %s3442_s21, %s2245_s23, %s2962_s9, %s2963_s4, %s2964_s0  }
 0x659   : > { %s2280_s6 = sshll.u32 %s3231_s25, 4  ;;  %s2250_s26 = scalar_lea.sflag [#allocation10], %s3211_s10  ;;  %s2281_s6 = int_to_ptr.vmem [resolvable:$true] %s2280_s6 }
 0x65a   : > { %s2817_s7 = scalar_lea.vmem %s2281_s6, 512  ;;  %s2965_s24 = smov [#allocation9]  }
 0x65b   : > { %p2818_p12 = scmp.ne.s32.totalorder %s2281_s6, %s2817_s7  ;;  %s2821_s1 = sshll.u32 %s2965_s24, 4  ;;  %s2822_s1 = int_to_ptr.vmem [resolvable:$false] %s2821_s1 }
 0x65c   : > { %s2823_s2 = scalar_lea.vmem %s2822_s1, 1024  ;;  %p2824_p3 = scmp.lt.s32.totalorder %s2281_s6, %s2822_s1 }
 0x65d   : > { %p2819_p10 = pnand %p2818_p12, %p3572_p5  ;;  %p2825_p4 = scmp.lt.s32.totalorder %s2823_s2, %s2817_s7 }
 0x65f   : > { %p2820_p11 = pneg %p2819_p10  ;;  %p2826_p8 = por %p2825_p4, %p2824_p3 }
 0x661   : > { %p2827_p6 = pnand %p2826_p8, %p2820_p11 }
 0x663   : > { %2830 = shalt.err (!%p2827_p6)
}
 0x664   : > { %s2831_s19 = scalar_lea.hbm %s3476_s8, 512  ;;  %s2835_s18 = scalar_lea.hbm %s3537_s3, 1024 }
 0x665   : > { %p2832_p7 = scmp.ne.s32.totalorder %s3476_s8, %s2831_s19  ;;  %p2836_p9 = scmp.lt.u32.totalorder %s3476_s8, %s3537_s3 }
 0x666   : > { %p2837_p13 = scmp.lt.u32.totalorder %s2835_s18, %s2831_s19  ;;  %p2839_p12 = scmp.lt.u32.totalorder %s2831_s19, %s3476_s8 }
 0x667   : > { %p2833_p0 = pnand %p2832_p7, %p3572_p5 }
 0x668   : > { %p2838_p2 = por %p2837_p13, %p2836_p9 }
 0x669   : > { %p2834_p1 = pneg %p2833_p0 }
 0x66a   : > { %p2840_p10 = por %p2839_p12, %p2838_p2 }
 0x66c   : > { %p2841_p11 = pnand %p2840_p10, %p2834_p1 }
 0x66e   : > { %2844 = shalt.err (!%p2841_p11)
}
 0x66f   : > { %2579 = dma.vmem_to_hbm [thread:$0]  (%p3572_p5), %s2281_s6, 512, %s3476_s8, %s2250_s26  }
 0x670 PF: > { %p2597_p3 = scmp.ge.s32.totalorder %s2947_s22, 2  ;;  %s2292_s2 = sand.u32 1, %s2919_s15  }
 0x671   : > { %p3573_p4 = scmp.ne.s32.totalorder %s3552_s28, 0  ;;  %s2293_s5 = scalar_lea.sflag [#allocation5], %s2292_s2 }
 0x673   : > { %p2590_p8 = pnand %p2597_p3, %p3573_p4 }
 0x675   : > { %2898 = dma.done.wait (!%p2590_p8), %s2293_s5, 1024  }
 0x676   : > { %2900 = vsyncadd (!%p2590_p8), %s2293_s5, 4294966272  ;;  %s2302_s23 = scalar_lea.sflag [#allocation10], %s2292_s2 }
 0x677   : > { %2902 = dma.done.wait (!%p2590_p8), %s2302_s23, 512  }
 0x678   : > { %2904 = vsyncadd (!%p2590_p8), %s2302_s23, 4294966784  ;;  %s26_s22 = sadd.s32 1, %s2947_s22   ;;  %s3574_s27 = smov %s3170_s12 }
 0x679   : > { %p23_p6 = scmp.ge.s32.totalorder %s26_s22, 14   ;;  %s3575_s19 = sld [smem:[#allocation15_spill]] }
 0x67a   : > { %s3576_s9 = sld [smem:[#allocation16_spill]]  ;;  %s3577_s21 = sld [smem:[#allocation17_spill]] }
 0x67b   : > { %s3578_s12 = smov %s2911_s13  ;;  %s3579_s13 = smov %s2915_s14 }
 0x67c   : > { %s3580_s14 = smov %s3151_s11  ;;  %s3581_s15 = smov %s2923_s16 }
 0x67d   : > { %s3582_s16 = smov %s2927_s17  ;;  %s3583_s17 = smov %s3574_s27 }
 0x67e   : > { %s3584_s18 = smov %s2939_s20  ;;  %25 = sbr.rel (!%p23_p6) target bundleno = 17 (0x11), region = 111 }
 0x680   : > { %s3585_s20 = smov %s3576_s9 }
 0x685   :  { %2307 = vsyncpa [#allocation4], 1 }
 0x686   :  { %2309 = vsyncpa [#allocation4 + $0x1], 1 }
 0x687   :  { %2310 = vsyncpa [#allocation7], 1 }
 0x688   :  { %2312 = vsyncpa [#allocation7 + $0x1], 1 }
 0x689   :  { %2313 = vsyncpa [#allocation5], 1 }
 0x68a   :  { %2315 = vsyncpa [#allocation5 + $0x1], 1 }
 0x68b   :  { %2316 = vsyncpa [#allocation10], 1 }
 0x68c   :  { %2318 = vsyncpa [#allocation10 + $0x1], 1 }

</bundles_post_ra>
